<compile_context>
chip_gen: v6e
topology: v6e:2x2x1
jax: 0.10.0
libtpu: 0.0.40
codegen_flags: <defaults>
</compile_context>

<pallas_src>
import functools

import jax
import jax.numpy as jnp
import numpy as np
from jax import lax
from jax.experimental import pallas as pl
from jax.experimental.pallas import tpu as pltpu


def _mask_guided_kernel(x_ref, w1_ref, b1_ref, w2_ref, b2_ref, wd_ref, bd_ref,
                        hmask_ref, wmask_ref, o_ref, *, W):
    # x_ref:     (1, Cin_p, H*W)    packed batch block, channels on sublanes
    # w1_ref:    (Cout_p, Cin_p)    block-diagonal conv1 1x1 weight
    # b1_ref:    (Cout_p, 1)
    # w2_ref:    (Cout_p, Cout_p)   block-diagonal conv2 1x1 weight
    # b2_ref:    (Cout_p, 1)
    # wd_ref:    (Cout_p, 25)       depthwise 5x5 taps, row-major (dy, dx)
    # bd_ref:    (Cout_p, 1)
    # hmask_ref: (5, H*W)           row-validity masks (0/1 f32), one per dy
    # wmask_ref: (5, H*W)           column-validity masks (0/1 f32), one per dx
    # o_ref:     (1, Cout_p, H*W)
    HW = x_ref.shape[-1]
    x = x_ref[0].astype(jnp.float32)                  # (Cin_p, HW)
    w1 = w1_ref[...]
    w2 = w2_ref[...]
    cout = w1.shape[0]

    def conv1x1(w, bias, inp):
        c_out, c_in = w.shape
        if c_in <= 8:
            # Tiny channel count: VPU broadcast-FMA over lane-dense rows; the MXU
            # would be latency-dominated at K<=8.
            acc = jnp.zeros((c_out, HW), jnp.float32)
            for ci in range(c_in):
                acc = acc + w[:, ci:ci + 1] * inp[ci:ci + 1, :]
            return acc + bias
        # Larger channel counts: one MXU push; bf16 operands, f32 accumulate.
        return jnp.dot(w.astype(jnp.bfloat16), inp.astype(jnp.bfloat16),
                       preferred_element_type=jnp.float32) + bias

    m = conv1x1(w1, b1_ref[...], x)                   # conv1 -> (Cout_p, HW)
    y = conv1x1(w2, b2_ref[...], m)                   # conv2 -> (Cout_p, HW)

    wm = wmask_ref[...]                               # (5, HW)
    hm = hmask_ref[...]                               # (5, HW)
    wd = wd_ref[...]                                  # (Cout_p, 25)

    # 5x5 depthwise conv, padding=2.
    # Stage 1: 5 column-rolled, column-masked buffers (4 XLU rolls + 5 muls).
    z = []
    for j in range(5):                                # dx = j - 2
        dx = j - 2
        r = y if dx == 0 else pltpu.roll(y, (-dx) % HW, axis=1)
        z.append(wm[j:j + 1, :] * r)

    # Stage 2: per-dy row rolls (whole-row shifts), row mask applied once per dy.
    acc = jnp.zeros((cout, HW), jnp.float32)
    for i in range(5):                                # dy = i - 2
        dy = i - 2
        acc_i = None
        for j in range(5):
            zz = z[j] if dy == 0 else pltpu.roll(z[j], (-dy * W) % HW, axis=1)
            k = i * 5 + j
            term = zz * wd[:, k:k + 1]
            acc_i = term if acc_i is None else acc_i + term
        acc = acc + hm[i:i + 1, :] * acc_i

    attn = jax.nn.sigmoid(acc + bd_ref[...])          # (Cout_p, HW)
    o_ref[0] = (m * (1.0 + attn)).astype(o_ref.dtype)  # mask + mask*attn


def mask_guided_mechanism(x_nchw, w1, b1, w2, b2, wd, bd):
    """x_nchw: (N, Cin, H, W); weights in PyTorch layout:
       w1 (Cout,Cin,1,1), w2 (Cout,Cout,1,1), wd (Cout,1,5,5), biases (Cout,)."""
    N, Cin, H, W = x_nchw.shape
    Cout = w1.shape[0]
    HW = H * W

    # Pack B_PACK images per grid step into the sublane dim (block-diag weights)
    # so (B_PACK*Cout, HW) fills the 8 sublanes of an f32 vreg.
    b_pack = max(1, 8 // Cout) if Cout < 8 else 1
    b_pack = min(b_pack, N)
    while b_pack > 1 and N % b_pack != 0:
        b_pack -= 1
    nb = N // b_pack
    cin_p, cout_p = b_pack * Cin, b_pack * Cout

    # NCHW consumed directly: only free reshapes, no transposes / HBM round trips.
    x2 = x_nchw.reshape(nb, cin_p, HW)

    eye = jnp.eye(b_pack, dtype=jnp.float32)
    w1_m = jnp.kron(eye, w1[:, :, 0, 0].astype(jnp.float32))        # (cout_p, cin_p)
    w2_m = jnp.kron(eye, w2[:, :, 0, 0].astype(jnp.float32))        # (cout_p, cout_p)
    wd_m = jnp.tile(wd[:, 0, :, :].reshape(Cout, 25).astype(jnp.float32),
                    (b_pack, 1))                                     # (cout_p, 25)
    b1_m = jnp.tile(b1.reshape(Cout, 1).astype(jnp.float32), (b_pack, 1))
    b2_m = jnp.tile(b2.reshape(Cout, 1).astype(jnp.float32), (b_pack, 1))
    bd_m = jnp.tile(bd.reshape(Cout, 1).astype(jnp.float32), (b_pack, 1))

    # Boundary masks for the 5x5 depthwise conv, precomputed once on the host.
    pos = np.arange(HW)
    h_idx, w_idx = pos // W, pos % W
    hmask = jnp.asarray(np.stack(
        [((h_idx + (i - 2) >= 0) & (h_idx + (i - 2) < H)) for i in range(5)]
    ).astype(np.float32))                                            # (5, HW)
    wmask = jnp.asarray(np.stack(
        [((w_idx + (j - 2) >= 0) & (w_idx + (j - 2) < W)) for j in range(5)]
    ).astype(np.float32))                                            # (5, HW)

    kernel = functools.partial(_mask_guided_kernel, W=W)

    flops = int(N * HW * (2 * Cin * Cout + 2 * Cout * Cout + 50 * Cout + 8 * Cout))
    bytes_accessed = int((N * (Cin + Cout) * HW) * np.dtype(x_nchw.dtype).itemsize
                         + (cin_p * cout_p + cout_p * cout_p + 25 * cout_p + 10 * HW) * 4)

    # TODO(synk): for large H*W add a spatial grid axis over H with a 2-row halo
    # (smaller tiles on v5e/v7x) so the per-block VMEM footprint stays under the
    # scoped-VMEM limit and both v7x TensorCores get work at small batch sizes.
    out2 = pl.pallas_call(
        kernel,
        out_shape=jax.ShapeDtypeStruct((nb, cout_p, HW), x_nchw.dtype),
        grid_spec=pltpu.PrefetchScalarGridSpec(
            num_scalar_prefetch=0,
            grid=(nb,),
            in_specs=[
                pl.BlockSpec((1, cin_p, HW), lambda n: (n, 0, 0)),
                pl.BlockSpec((cout_p, cin_p), lambda n: (0, 0)),
                pl.BlockSpec((cout_p, 1), lambda n: (0, 0)),
                pl.BlockSpec((cout_p, cout_p), lambda n: (0, 0)),
                pl.BlockSpec((cout_p, 1), lambda n: (0, 0)),
                pl.BlockSpec((cout_p, 25), lambda n: (0, 0)),
                pl.BlockSpec((cout_p, 1), lambda n: (0, 0)),
                pl.BlockSpec((5, HW), lambda n: (0, 0)),
                pl.BlockSpec((5, HW), lambda n: (0, 0)),
            ],
            out_specs=pl.BlockSpec((1, cout_p, HW), lambda n: (n, 0, 0)),
        ),
        compiler_params=pltpu.CompilerParams(
            dimension_semantics=("parallel",)),
        cost_estimate=pl.CostEstimate(
            flops=flops,
            transcendentals=int(N * HW * Cout),
            bytes_accessed=bytes_accessed),
    )(x2, w1_m, b1_m, w2_m, b2_m, wd_m, bd_m, hmask, wmask)

    return out2.reshape(N, Cout, H, W)


def reference_nchw(x, w1, b1, w2, b2, wd, bd):
    dn = ("NCHW", "OIHW", "NCHW")
    m = lax.conv_general_dilated(x, w1, (1, 1), "VALID",
                                 dimension_numbers=dn) + b1[None, :, None, None]
    y = lax.conv_general_dilated(m, w2, (1, 1), "VALID",
                                 dimension_numbers=dn) + b2[None, :, None, None]
    d = lax.conv_general_dilated(y, wd, (1, 1), ((2, 2), (2, 2)),
                                 dimension_numbers=dn,
                                 feature_group_count=wd.shape[0]) + bd[None, :, None, None]
    attn = jax.nn.sigmoid(d)
    return m + m * attn


if __name__ == "__main__":
    N, Cin, Cout, H, W = 2, 4, 4, 16, 16

    key = jax.random.PRNGKey(0)
    k = jax.random.split(key, 8)
    x = jax.random.normal(k[0], (N, Cin, H, W), jnp.float32)
    w1 = jax.random.normal(k[1], (Cout, Cin, 1, 1), jnp.float32) * 0.2
    b1 = jax.random.normal(k[2], (Cout,), jnp.float32) * 0.1
    w2 = jax.random.normal(k[3], (Cout, Cout, 1, 1), jnp.float32) * 0.2
    b2 = jax.random.normal(k[4], (Cout,), jnp.float32) * 0.1
    wd = jax.random.normal(k[5], (Cout, 1, 5, 5), jnp.float32) * 0.2
    bd = jax.random.normal(k[6], (Cout,), jnp.float32) * 0.1

    out = mask_guided_mechanism(x, w1, b1, w2, b2, wd, bd)
    out = jax.block_until_ready(out)

    ref = jax.block_until_ready(reference_nchw(x, w1, b1, w2, b2, wd, bd))
    assert out.shape == (N, Cout, H, W)
    np.testing.assert_allclose(np.asarray(out), np.asarray(ref),
                               rtol=1e-4, atol=1e-4)
    print("KERNEL_OK")
</pallas_src>

<mosaic_0001>
module attributes {stable_mosaic.version = 11 : i64} {
  func.func @_mask_guided_kernel(%arg0: i32, %arg1: memref<1x8x256xf32, #tpu.memory_space<vmem>>, %arg2: memref<8x8xf32, #tpu.memory_space<vmem>>, %arg3: memref<8x1xf32, #tpu.memory_space<vmem>>, %arg4: memref<8x8xf32, #tpu.memory_space<vmem>>, %arg5: memref<8x1xf32, #tpu.memory_space<vmem>>, %arg6: memref<8x25xf32, #tpu.memory_space<vmem>>, %arg7: memref<8x1xf32, #tpu.memory_space<vmem>>, %arg8: memref<5x256xf32, #tpu.memory_space<vmem>>, %arg9: memref<5x256xf32, #tpu.memory_space<vmem>>, %arg10: memref<1x8x256xf32, #tpu.memory_space<vmem>>) attributes {dimension_semantics = [#tpu.dimension_semantics<parallel>], iteration_bounds = array<i64: 1>, scalar_prefetch = 0 : i64, scratch_operands = 0 : i64, tpu.core_type = #tpu.core_type<tc>, window_params = [{transform_indices = @transform_0, window_bounds = array<i64: 1, 8, 256>}, {pipeline_mode = #tpu.pipeline_mode<synchronous>, transform_indices = @transform_1, window_bounds = array<i64: 8, 8>}, {pipeline_mode = #tpu.pipeline_mode<synchronous>, transform_indices = @transform_2, window_bounds = array<i64: 8, 1>}, {pipeline_mode = #tpu.pipeline_mode<synchronous>, transform_indices = @transform_3, window_bounds = array<i64: 8, 8>}, {pipeline_mode = #tpu.pipeline_mode<synchronous>, transform_indices = @transform_4, window_bounds = array<i64: 8, 1>}, {pipeline_mode = #tpu.pipeline_mode<synchronous>, transform_indices = @transform_5, window_bounds = array<i64: 8, 25>}, {pipeline_mode = #tpu.pipeline_mode<synchronous>, transform_indices = @transform_6, window_bounds = array<i64: 8, 1>}, {pipeline_mode = #tpu.pipeline_mode<synchronous>, transform_indices = @transform_7, window_bounds = array<i64: 5, 256>}, {pipeline_mode = #tpu.pipeline_mode<synchronous>, transform_indices = @transform_8, window_bounds = array<i64: 5, 256>}, {transform_indices = @transform_9, window_bounds = array<i64: 1, 8, 256>}]} {
    %c0 = arith.constant 0 : index
    %c0_0 = arith.constant 0 : index
    %c0_1 = arith.constant 0 : index
    %0 = vector.load %arg1[%c0, %c0_0, %c0_1] : memref<1x8x256xf32, #tpu.memory_space<vmem>>, vector<1x8x256xf32>
    %1 = vector.shape_cast %0 : vector<1x8x256xf32> to vector<8x256xf32>
    %c0_2 = arith.constant 0 : index
    %c0_3 = arith.constant 0 : index
    %2 = vector.load %arg2[%c0_2, %c0_3] : memref<8x8xf32, #tpu.memory_space<vmem>>, vector<8x8xf32>
    %c0_4 = arith.constant 0 : index
    %c0_5 = arith.constant 0 : index
    %3 = vector.load %arg4[%c0_4, %c0_5] : memref<8x8xf32, #tpu.memory_space<vmem>>, vector<8x8xf32>
    %c0_6 = arith.constant 0 : index
    %c0_7 = arith.constant 0 : index
    %4 = vector.load %arg3[%c0_6, %c0_7] : memref<8x1xf32, #tpu.memory_space<vmem>>, vector<8x1xf32>
    %cst = arith.constant 0.000000e+00 : f32
    %5 = vector.broadcast %cst : f32 to vector<8x256xf32>
    %6 = vector.extract_strided_slice %2 {offsets = [0, 0], sizes = [8, 1], strides = [1, 1]} : vector<8x8xf32> to vector<8x1xf32>
    %7 = vector.extract_strided_slice %1 {offsets = [0, 0], sizes = [1, 256], strides = [1, 1]} : vector<8x256xf32> to vector<1x256xf32>
    %8 = vector.broadcast %6 : vector<8x1xf32> to vector<8x256xf32>
    %9 = vector.broadcast %7 : vector<1x256xf32> to vector<8x256xf32>
    %10 = arith.mulf %8, %9 : vector<8x256xf32>
    %11 = arith.addf %5, %10 : vector<8x256xf32>
    %12 = vector.extract_strided_slice %2 {offsets = [0, 1], sizes = [8, 1], strides = [1, 1]} : vector<8x8xf32> to vector<8x1xf32>
    %13 = vector.extract_strided_slice %1 {offsets = [1, 0], sizes = [1, 256], strides = [1, 1]} : vector<8x256xf32> to vector<1x256xf32>
    %14 = vector.broadcast %12 : vector<8x1xf32> to vector<8x256xf32>
    %15 = vector.broadcast %13 : vector<1x256xf32> to vector<8x256xf32>
    %16 = arith.mulf %14, %15 : vector<8x256xf32>
    %17 = arith.addf %11, %16 : vector<8x256xf32>
    %18 = vector.extract_strided_slice %2 {offsets = [0, 2], sizes = [8, 1], strides = [1, 1]} : vector<8x8xf32> to vector<8x1xf32>
    %19 = vector.extract_strided_slice %1 {offsets = [2, 0], sizes = [1, 256], strides = [1, 1]} : vector<8x256xf32> to vector<1x256xf32>
    %20 = vector.broadcast %18 : vector<8x1xf32> to vector<8x256xf32>
    %21 = vector.broadcast %19 : vector<1x256xf32> to vector<8x256xf32>
    %22 = arith.mulf %20, %21 : vector<8x256xf32>
    %23 = arith.addf %17, %22 : vector<8x256xf32>
    %24 = vector.extract_strided_slice %2 {offsets = [0, 3], sizes = [8, 1], strides = [1, 1]} : vector<8x8xf32> to vector<8x1xf32>
    %25 = vector.extract_strided_slice %1 {offsets = [3, 0], sizes = [1, 256], strides = [1, 1]} : vector<8x256xf32> to vector<1x256xf32>
    %26 = vector.broadcast %24 : vector<8x1xf32> to vector<8x256xf32>
    %27 = vector.broadcast %25 : vector<1x256xf32> to vector<8x256xf32>
    %28 = arith.mulf %26, %27 : vector<8x256xf32>
    %29 = arith.addf %23, %28 : vector<8x256xf32>
    %30 = vector.extract_strided_slice %2 {offsets = [0, 4], sizes = [8, 1], strides = [1, 1]} : vector<8x8xf32> to vector<8x1xf32>
    %31 = vector.extract_strided_slice %1 {offsets = [4, 0], sizes = [1, 256], strides = [1, 1]} : vector<8x256xf32> to vector<1x256xf32>
    %32 = vector.broadcast %30 : vector<8x1xf32> to vector<8x256xf32>
    %33 = vector.broadcast %31 : vector<1x256xf32> to vector<8x256xf32>
    %34 = arith.mulf %32, %33 : vector<8x256xf32>
    %35 = arith.addf %29, %34 : vector<8x256xf32>
    %36 = vector.extract_strided_slice %2 {offsets = [0, 5], sizes = [8, 1], strides = [1, 1]} : vector<8x8xf32> to vector<8x1xf32>
    %37 = vector.extract_strided_slice %1 {offsets = [5, 0], sizes = [1, 256], strides = [1, 1]} : vector<8x256xf32> to vector<1x256xf32>
    %38 = vector.broadcast %36 : vector<8x1xf32> to vector<8x256xf32>
    %39 = vector.broadcast %37 : vector<1x256xf32> to vector<8x256xf32>
    %40 = arith.mulf %38, %39 : vector<8x256xf32>
    %41 = arith.addf %35, %40 : vector<8x256xf32>
    %42 = vector.extract_strided_slice %2 {offsets = [0, 6], sizes = [8, 1], strides = [1, 1]} : vector<8x8xf32> to vector<8x1xf32>
    %43 = vector.extract_strided_slice %1 {offsets = [6, 0], sizes = [1, 256], strides = [1, 1]} : vector<8x256xf32> to vector<1x256xf32>
    %44 = vector.broadcast %42 : vector<8x1xf32> to vector<8x256xf32>
    %45 = vector.broadcast %43 : vector<1x256xf32> to vector<8x256xf32>
    %46 = arith.mulf %44, %45 : vector<8x256xf32>
    %47 = arith.addf %41, %46 : vector<8x256xf32>
    %48 = vector.extract_strided_slice %2 {offsets = [0, 7], sizes = [8, 1], strides = [1, 1]} : vector<8x8xf32> to vector<8x1xf32>
    %49 = vector.extract_strided_slice %1 {offsets = [7, 0], sizes = [1, 256], strides = [1, 1]} : vector<8x256xf32> to vector<1x256xf32>
    %50 = vector.broadcast %48 : vector<8x1xf32> to vector<8x256xf32>
    %51 = vector.broadcast %49 : vector<1x256xf32> to vector<8x256xf32>
    %52 = arith.mulf %50, %51 : vector<8x256xf32>
    %53 = arith.addf %47, %52 : vector<8x256xf32>
    %54 = vector.broadcast %4 : vector<8x1xf32> to vector<8x256xf32>
    %55 = arith.addf %53, %54 : vector<8x256xf32>
    %c0_8 = arith.constant 0 : index
    %c0_9 = arith.constant 0 : index
    %56 = vector.load %arg5[%c0_8, %c0_9] : memref<8x1xf32, #tpu.memory_space<vmem>>, vector<8x1xf32>
    %cst_10 = arith.constant 0.000000e+00 : f32
    %57 = vector.broadcast %cst_10 : f32 to vector<8x256xf32>
    %58 = vector.extract_strided_slice %3 {offsets = [0, 0], sizes = [8, 1], strides = [1, 1]} : vector<8x8xf32> to vector<8x1xf32>
    %59 = vector.extract_strided_slice %55 {offsets = [0, 0], sizes = [1, 256], strides = [1, 1]} : vector<8x256xf32> to vector<1x256xf32>
    %60 = vector.broadcast %58 : vector<8x1xf32> to vector<8x256xf32>
    %61 = vector.broadcast %59 : vector<1x256xf32> to vector<8x256xf32>
    %62 = arith.mulf %60, %61 : vector<8x256xf32>
    %63 = arith.addf %57, %62 : vector<8x256xf32>
    %64 = vector.extract_strided_slice %3 {offsets = [0, 1], sizes = [8, 1], strides = [1, 1]} : vector<8x8xf32> to vector<8x1xf32>
    %65 = vector.extract_strided_slice %55 {offsets = [1, 0], sizes = [1, 256], strides = [1, 1]} : vector<8x256xf32> to vector<1x256xf32>
    %66 = vector.broadcast %64 : vector<8x1xf32> to vector<8x256xf32>
    %67 = vector.broadcast %65 : vector<1x256xf32> to vector<8x256xf32>
    %68 = arith.mulf %66, %67 : vector<8x256xf32>
    %69 = arith.addf %63, %68 : vector<8x256xf32>
    %70 = vector.extract_strided_slice %3 {offsets = [0, 2], sizes = [8, 1], strides = [1, 1]} : vector<8x8xf32> to vector<8x1xf32>
    %71 = vector.extract_strided_slice %55 {offsets = [2, 0], sizes = [1, 256], strides = [1, 1]} : vector<8x256xf32> to vector<1x256xf32>
    %72 = vector.broadcast %70 : vector<8x1xf32> to vector<8x256xf32>
    %73 = vector.broadcast %71 : vector<1x256xf32> to vector<8x256xf32>
    %74 = arith.mulf %72, %73 : vector<8x256xf32>
    %75 = arith.addf %69, %74 : vector<8x256xf32>
    %76 = vector.extract_strided_slice %3 {offsets = [0, 3], sizes = [8, 1], strides = [1, 1]} : vector<8x8xf32> to vector<8x1xf32>
    %77 = vector.extract_strided_slice %55 {offsets = [3, 0], sizes = [1, 256], strides = [1, 1]} : vector<8x256xf32> to vector<1x256xf32>
    %78 = vector.broadcast %76 : vector<8x1xf32> to vector<8x256xf32>
    %79 = vector.broadcast %77 : vector<1x256xf32> to vector<8x256xf32>
    %80 = arith.mulf %78, %79 : vector<8x256xf32>
    %81 = arith.addf %75, %80 : vector<8x256xf32>
    %82 = vector.extract_strided_slice %3 {offsets = [0, 4], sizes = [8, 1], strides = [1, 1]} : vector<8x8xf32> to vector<8x1xf32>
    %83 = vector.extract_strided_slice %55 {offsets = [4, 0], sizes = [1, 256], strides = [1, 1]} : vector<8x256xf32> to vector<1x256xf32>
    %84 = vector.broadcast %82 : vector<8x1xf32> to vector<8x256xf32>
    %85 = vector.broadcast %83 : vector<1x256xf32> to vector<8x256xf32>
    %86 = arith.mulf %84, %85 : vector<8x256xf32>
    %87 = arith.addf %81, %86 : vector<8x256xf32>
    %88 = vector.extract_strided_slice %3 {offsets = [0, 5], sizes = [8, 1], strides = [1, 1]} : vector<8x8xf32> to vector<8x1xf32>
    %89 = vector.extract_strided_slice %55 {offsets = [5, 0], sizes = [1, 256], strides = [1, 1]} : vector<8x256xf32> to vector<1x256xf32>
    %90 = vector.broadcast %88 : vector<8x1xf32> to vector<8x256xf32>
    %91 = vector.broadcast %89 : vector<1x256xf32> to vector<8x256xf32>
    %92 = arith.mulf %90, %91 : vector<8x256xf32>
    %93 = arith.addf %87, %92 : vector<8x256xf32>
    %94 = vector.extract_strided_slice %3 {offsets = [0, 6], sizes = [8, 1], strides = [1, 1]} : vector<8x8xf32> to vector<8x1xf32>
    %95 = vector.extract_strided_slice %55 {offsets = [6, 0], sizes = [1, 256], strides = [1, 1]} : vector<8x256xf32> to vector<1x256xf32>
    %96 = vector.broadcast %94 : vector<8x1xf32> to vector<8x256xf32>
    %97 = vector.broadcast %95 : vector<1x256xf32> to vector<8x256xf32>
    %98 = arith.mulf %96, %97 : vector<8x256xf32>
    %99 = arith.addf %93, %98 : vector<8x256xf32>
    %100 = vector.extract_strided_slice %3 {offsets = [0, 7], sizes = [8, 1], strides = [1, 1]} : vector<8x8xf32> to vector<8x1xf32>
    %101 = vector.extract_strided_slice %55 {offsets = [7, 0], sizes = [1, 256], strides = [1, 1]} : vector<8x256xf32> to vector<1x256xf32>
    %102 = vector.broadcast %100 : vector<8x1xf32> to vector<8x256xf32>
    %103 = vector.broadcast %101 : vector<1x256xf32> to vector<8x256xf32>
    %104 = arith.mulf %102, %103 : vector<8x256xf32>
    %105 = arith.addf %99, %104 : vector<8x256xf32>
    %106 = vector.broadcast %56 : vector<8x1xf32> to vector<8x256xf32>
    %107 = arith.addf %105, %106 : vector<8x256xf32>
    %c0_11 = arith.constant 0 : index
    %c0_12 = arith.constant 0 : index
    %108 = vector.load %arg9[%c0_11, %c0_12] : memref<5x256xf32, #tpu.memory_space<vmem>>, vector<5x256xf32>
    %c0_13 = arith.constant 0 : index
    %c0_14 = arith.constant 0 : index
    %109 = vector.load %arg8[%c0_13, %c0_14] : memref<5x256xf32, #tpu.memory_space<vmem>>, vector<5x256xf32>
    %c0_15 = arith.constant 0 : index
    %c0_16 = arith.constant 0 : index
    %110 = vector.load %arg6[%c0_15, %c0_16] : memref<8x25xf32, #tpu.memory_space<vmem>>, vector<8x25xf32>
    %c2_i32 = arith.constant 2 : i32
    %111 = tpu.dynamic_rotate %107 by %c2_i32 dim 1 : vector<8x256xf32>, i32 -> vector<8x256xf32>
    %112 = vector.extract_strided_slice %108 {offsets = [0, 0], sizes = [1, 256], strides = [1, 1]} : vector<5x256xf32> to vector<1x256xf32>
    %113 = vector.broadcast %112 : vector<1x256xf32> to vector<8x256xf32>
    %114 = arith.mulf %113, %111 : vector<8x256xf32>
    %c1_i32 = arith.constant 1 : i32
    %115 = tpu.dynamic_rotate %107 by %c1_i32 dim 1 : vector<8x256xf32>, i32 -> vector<8x256xf32>
    %116 = vector.extract_strided_slice %108 {offsets = [1, 0], sizes = [1, 256], strides = [1, 1]} : vector<5x256xf32> to vector<1x256xf32>
    %117 = vector.broadcast %116 : vector<1x256xf32> to vector<8x256xf32>
    %118 = arith.mulf %117, %115 : vector<8x256xf32>
    %119 = vector.extract_strided_slice %108 {offsets = [2, 0], sizes = [1, 256], strides = [1, 1]} : vector<5x256xf32> to vector<1x256xf32>
    %120 = vector.broadcast %119 : vector<1x256xf32> to vector<8x256xf32>
    %121 = arith.mulf %120, %107 : vector<8x256xf32>
    %c255_i32 = arith.constant 255 : i32
    %122 = tpu.dynamic_rotate %107 by %c255_i32 dim 1 : vector<8x256xf32>, i32 -> vector<8x256xf32>
    %123 = vector.extract_strided_slice %108 {offsets = [3, 0], sizes = [1, 256], strides = [1, 1]} : vector<5x256xf32> to vector<1x256xf32>
    %124 = vector.broadcast %123 : vector<1x256xf32> to vector<8x256xf32>
    %125 = arith.mulf %124, %122 : vector<8x256xf32>
    %c254_i32 = arith.constant 254 : i32
    %126 = tpu.dynamic_rotate %107 by %c254_i32 dim 1 : vector<8x256xf32>, i32 -> vector<8x256xf32>
    %127 = vector.extract_strided_slice %108 {offsets = [4, 0], sizes = [1, 256], strides = [1, 1]} : vector<5x256xf32> to vector<1x256xf32>
    %128 = vector.broadcast %127 : vector<1x256xf32> to vector<8x256xf32>
    %129 = arith.mulf %128, %126 : vector<8x256xf32>
    %cst_17 = arith.constant 0.000000e+00 : f32
    %130 = vector.broadcast %cst_17 : f32 to vector<8x256xf32>
    %c32_i32 = arith.constant 32 : i32
    %131 = tpu.dynamic_rotate %114 by %c32_i32 dim 1 : vector<8x256xf32>, i32 -> vector<8x256xf32>
    %132 = vector.extract_strided_slice %110 {offsets = [0, 0], sizes = [8, 1], strides = [1, 1]} : vector<8x25xf32> to vector<8x1xf32>
    %133 = vector.broadcast %132 : vector<8x1xf32> to vector<8x256xf32>
    %134 = arith.mulf %131, %133 : vector<8x256xf32>
    %c32_i32_18 = arith.constant 32 : i32
    %135 = tpu.dynamic_rotate %118 by %c32_i32_18 dim 1 : vector<8x256xf32>, i32 -> vector<8x256xf32>
    %136 = vector.extract_strided_slice %110 {offsets = [0, 1], sizes = [8, 1], strides = [1, 1]} : vector<8x25xf32> to vector<8x1xf32>
    %137 = vector.broadcast %136 : vector<8x1xf32> to vector<8x256xf32>
    %138 = arith.mulf %135, %137 : vector<8x256xf32>
    %139 = arith.addf %134, %138 : vector<8x256xf32>
    %c32_i32_19 = arith.constant 32 : i32
    %140 = tpu.dynamic_rotate %121 by %c32_i32_19 dim 1 : vector<8x256xf32>, i32 -> vector<8x256xf32>
    %141 = vector.extract_strided_slice %110 {offsets = [0, 2], sizes = [8, 1], strides = [1, 1]} : vector<8x25xf32> to vector<8x1xf32>
    %142 = vector.broadcast %141 : vector<8x1xf32> to vector<8x256xf32>
    %143 = arith.mulf %140, %142 : vector<8x256xf32>
    %144 = arith.addf %139, %143 : vector<8x256xf32>
    %c32_i32_20 = arith.constant 32 : i32
    %145 = tpu.dynamic_rotate %125 by %c32_i32_20 dim 1 : vector<8x256xf32>, i32 -> vector<8x256xf32>
    %146 = vector.extract_strided_slice %110 {offsets = [0, 3], sizes = [8, 1], strides = [1, 1]} : vector<8x25xf32> to vector<8x1xf32>
    %147 = vector.broadcast %146 : vector<8x1xf32> to vector<8x256xf32>
    %148 = arith.mulf %145, %147 : vector<8x256xf32>
    %149 = arith.addf %144, %148 : vector<8x256xf32>
    %c32_i32_21 = arith.constant 32 : i32
    %150 = tpu.dynamic_rotate %129 by %c32_i32_21 dim 1 : vector<8x256xf32>, i32 -> vector<8x256xf32>
    %151 = vector.extract_strided_slice %110 {offsets = [0, 4], sizes = [8, 1], strides = [1, 1]} : vector<8x25xf32> to vector<8x1xf32>
    %152 = vector.broadcast %151 : vector<8x1xf32> to vector<8x256xf32>
    %153 = arith.mulf %150, %152 : vector<8x256xf32>
    %154 = arith.addf %149, %153 : vector<8x256xf32>
    %155 = vector.extract_strided_slice %109 {offsets = [0, 0], sizes = [1, 256], strides = [1, 1]} : vector<5x256xf32> to vector<1x256xf32>
    %156 = vector.broadcast %155 : vector<1x256xf32> to vector<8x256xf32>
    %157 = arith.mulf %156, %154 : vector<8x256xf32>
    %158 = arith.addf %130, %157 : vector<8x256xf32>
    %c16_i32 = arith.constant 16 : i32
    %159 = tpu.dynamic_rotate %114 by %c16_i32 dim 1 : vector<8x256xf32>, i32 -> vector<8x256xf32>
    %160 = vector.extract_strided_slice %110 {offsets = [0, 5], sizes = [8, 1], strides = [1, 1]} : vector<8x25xf32> to vector<8x1xf32>
    %161 = vector.broadcast %160 : vector<8x1xf32> to vector<8x256xf32>
    %162 = arith.mulf %159, %161 : vector<8x256xf32>
    %c16_i32_22 = arith.constant 16 : i32
    %163 = tpu.dynamic_rotate %118 by %c16_i32_22 dim 1 : vector<8x256xf32>, i32 -> vector<8x256xf32>
    %164 = vector.extract_strided_slice %110 {offsets = [0, 6], sizes = [8, 1], strides = [1, 1]} : vector<8x25xf32> to vector<8x1xf32>
    %165 = vector.broadcast %164 : vector<8x1xf32> to vector<8x256xf32>
    %166 = arith.mulf %163, %165 : vector<8x256xf32>
    %167 = arith.addf %162, %166 : vector<8x256xf32>
    %c16_i32_23 = arith.constant 16 : i32
    %168 = tpu.dynamic_rotate %121 by %c16_i32_23 dim 1 : vector<8x256xf32>, i32 -> vector<8x256xf32>
    %169 = vector.extract_strided_slice %110 {offsets = [0, 7], sizes = [8, 1], strides = [1, 1]} : vector<8x25xf32> to vector<8x1xf32>
    %170 = vector.broadcast %169 : vector<8x1xf32> to vector<8x256xf32>
    %171 = arith.mulf %168, %170 : vector<8x256xf32>
    %172 = arith.addf %167, %171 : vector<8x256xf32>
    %c16_i32_24 = arith.constant 16 : i32
    %173 = tpu.dynamic_rotate %125 by %c16_i32_24 dim 1 : vector<8x256xf32>, i32 -> vector<8x256xf32>
    %174 = vector.extract_strided_slice %110 {offsets = [0, 8], sizes = [8, 1], strides = [1, 1]} : vector<8x25xf32> to vector<8x1xf32>
    %175 = vector.broadcast %174 : vector<8x1xf32> to vector<8x256xf32>
    %176 = arith.mulf %173, %175 : vector<8x256xf32>
    %177 = arith.addf %172, %176 : vector<8x256xf32>
    %c16_i32_25 = arith.constant 16 : i32
    %178 = tpu.dynamic_rotate %129 by %c16_i32_25 dim 1 : vector<8x256xf32>, i32 -> vector<8x256xf32>
    %179 = vector.extract_strided_slice %110 {offsets = [0, 9], sizes = [8, 1], strides = [1, 1]} : vector<8x25xf32> to vector<8x1xf32>
    %180 = vector.broadcast %179 : vector<8x1xf32> to vector<8x256xf32>
    %181 = arith.mulf %178, %180 : vector<8x256xf32>
    %182 = arith.addf %177, %181 : vector<8x256xf32>
    %183 = vector.extract_strided_slice %109 {offsets = [1, 0], sizes = [1, 256], strides = [1, 1]} : vector<5x256xf32> to vector<1x256xf32>
    %184 = vector.broadcast %183 : vector<1x256xf32> to vector<8x256xf32>
    %185 = arith.mulf %184, %182 : vector<8x256xf32>
    %186 = arith.addf %158, %185 : vector<8x256xf32>
    %187 = vector.extract_strided_slice %110 {offsets = [0, 10], sizes = [8, 1], strides = [1, 1]} : vector<8x25xf32> to vector<8x1xf32>
    %188 = vector.broadcast %187 : vector<8x1xf32> to vector<8x256xf32>
    %189 = arith.mulf %114, %188 : vector<8x256xf32>
    %190 = vector.extract_strided_slice %110 {offsets = [0, 11], sizes = [8, 1], strides = [1, 1]} : vector<8x25xf32> to vector<8x1xf32>
    %191 = vector.broadcast %190 : vector<8x1xf32> to vector<8x256xf32>
    %192 = arith.mulf %118, %191 : vector<8x256xf32>
    %193 = arith.addf %189, %192 : vector<8x256xf32>
    %194 = vector.extract_strided_slice %110 {offsets = [0, 12], sizes = [8, 1], strides = [1, 1]} : vector<8x25xf32> to vector<8x1xf32>
    %195 = vector.broadcast %194 : vector<8x1xf32> to vector<8x256xf32>
    %196 = arith.mulf %121, %195 : vector<8x256xf32>
    %197 = arith.addf %193, %196 : vector<8x256xf32>
    %198 = vector.extract_strided_slice %110 {offsets = [0, 13], sizes = [8, 1], strides = [1, 1]} : vector<8x25xf32> to vector<8x1xf32>
    %199 = vector.broadcast %198 : vector<8x1xf32> to vector<8x256xf32>
    %200 = arith.mulf %125, %199 : vector<8x256xf32>
    %201 = arith.addf %197, %200 : vector<8x256xf32>
    %202 = vector.extract_strided_slice %110 {offsets = [0, 14], sizes = [8, 1], strides = [1, 1]} : vector<8x25xf32> to vector<8x1xf32>
    %203 = vector.broadcast %202 : vector<8x1xf32> to vector<8x256xf32>
    %204 = arith.mulf %129, %203 : vector<8x256xf32>
    %205 = arith.addf %201, %204 : vector<8x256xf32>
    %206 = vector.extract_strided_slice %109 {offsets = [2, 0], sizes = [1, 256], strides = [1, 1]} : vector<5x256xf32> to vector<1x256xf32>
    %207 = vector.broadcast %206 : vector<1x256xf32> to vector<8x256xf32>
    %208 = arith.mulf %207, %205 : vector<8x256xf32>
    %209 = arith.addf %186, %208 : vector<8x256xf32>
    %c240_i32 = arith.constant 240 : i32
    %210 = tpu.dynamic_rotate %114 by %c240_i32 dim 1 : vector<8x256xf32>, i32 -> vector<8x256xf32>
    %211 = vector.extract_strided_slice %110 {offsets = [0, 15], sizes = [8, 1], strides = [1, 1]} : vector<8x25xf32> to vector<8x1xf32>
    %212 = vector.broadcast %211 : vector<8x1xf32> to vector<8x256xf32>
    %213 = arith.mulf %210, %212 : vector<8x256xf32>
    %c240_i32_26 = arith.constant 240 : i32
    %214 = tpu.dynamic_rotate %118 by %c240_i32_26 dim 1 : vector<8x256xf32>, i32 -> vector<8x256xf32>
    %215 = vector.extract_strided_slice %110 {offsets = [0, 16], sizes = [8, 1], strides = [1, 1]} : vector<8x25xf32> to vector<8x1xf32>
    %216 = vector.broadcast %215 : vector<8x1xf32> to vector<8x256xf32>
    %217 = arith.mulf %214, %216 : vector<8x256xf32>
    %218 = arith.addf %213, %217 : vector<8x256xf32>
    %c240_i32_27 = arith.constant 240 : i32
    %219 = tpu.dynamic_rotate %121 by %c240_i32_27 dim 1 : vector<8x256xf32>, i32 -> vector<8x256xf32>
    %220 = vector.extract_strided_slice %110 {offsets = [0, 17], sizes = [8, 1], strides = [1, 1]} : vector<8x25xf32> to vector<8x1xf32>
    %221 = vector.broadcast %220 : vector<8x1xf32> to vector<8x256xf32>
    %222 = arith.mulf %219, %221 : vector<8x256xf32>
    %223 = arith.addf %218, %222 : vector<8x256xf32>
    %c240_i32_28 = arith.constant 240 : i32
    %224 = tpu.dynamic_rotate %125 by %c240_i32_28 dim 1 : vector<8x256xf32>, i32 -> vector<8x256xf32>
    %225 = vector.extract_strided_slice %110 {offsets = [0, 18], sizes = [8, 1], strides = [1, 1]} : vector<8x25xf32> to vector<8x1xf32>
    %226 = vector.broadcast %225 : vector<8x1xf32> to vector<8x256xf32>
    %227 = arith.mulf %224, %226 : vector<8x256xf32>
    %228 = arith.addf %223, %227 : vector<8x256xf32>
    %c240_i32_29 = arith.constant 240 : i32
    %229 = tpu.dynamic_rotate %129 by %c240_i32_29 dim 1 : vector<8x256xf32>, i32 -> vector<8x256xf32>
    %230 = vector.extract_strided_slice %110 {offsets = [0, 19], sizes = [8, 1], strides = [1, 1]} : vector<8x25xf32> to vector<8x1xf32>
    %231 = vector.broadcast %230 : vector<8x1xf32> to vector<8x256xf32>
    %232 = arith.mulf %229, %231 : vector<8x256xf32>
    %233 = arith.addf %228, %232 : vector<8x256xf32>
    %234 = vector.extract_strided_slice %109 {offsets = [3, 0], sizes = [1, 256], strides = [1, 1]} : vector<5x256xf32> to vector<1x256xf32>
    %235 = vector.broadcast %234 : vector<1x256xf32> to vector<8x256xf32>
    %236 = arith.mulf %235, %233 : vector<8x256xf32>
    %237 = arith.addf %209, %236 : vector<8x256xf32>
    %c224_i32 = arith.constant 224 : i32
    %238 = tpu.dynamic_rotate %114 by %c224_i32 dim 1 : vector<8x256xf32>, i32 -> vector<8x256xf32>
    %239 = vector.extract_strided_slice %110 {offsets = [0, 20], sizes = [8, 1], strides = [1, 1]} : vector<8x25xf32> to vector<8x1xf32>
    %240 = vector.broadcast %239 : vector<8x1xf32> to vector<8x256xf32>
    %241 = arith.mulf %238, %240 : vector<8x256xf32>
    %c224_i32_30 = arith.constant 224 : i32
    %242 = tpu.dynamic_rotate %118 by %c224_i32_30 dim 1 : vector<8x256xf32>, i32 -> vector<8x256xf32>
    %243 = vector.extract_strided_slice %110 {offsets = [0, 21], sizes = [8, 1], strides = [1, 1]} : vector<8x25xf32> to vector<8x1xf32>
    %244 = vector.broadcast %243 : vector<8x1xf32> to vector<8x256xf32>
    %245 = arith.mulf %242, %244 : vector<8x256xf32>
    %246 = arith.addf %241, %245 : vector<8x256xf32>
    %c224_i32_31 = arith.constant 224 : i32
    %247 = tpu.dynamic_rotate %121 by %c224_i32_31 dim 1 : vector<8x256xf32>, i32 -> vector<8x256xf32>
    %248 = vector.extract_strided_slice %110 {offsets = [0, 22], sizes = [8, 1], strides = [1, 1]} : vector<8x25xf32> to vector<8x1xf32>
    %249 = vector.broadcast %248 : vector<8x1xf32> to vector<8x256xf32>
    %250 = arith.mulf %247, %249 : vector<8x256xf32>
    %251 = arith.addf %246, %250 : vector<8x256xf32>
    %c224_i32_32 = arith.constant 224 : i32
    %252 = tpu.dynamic_rotate %125 by %c224_i32_32 dim 1 : vector<8x256xf32>, i32 -> vector<8x256xf32>
    %253 = vector.extract_strided_slice %110 {offsets = [0, 23], sizes = [8, 1], strides = [1, 1]} : vector<8x25xf32> to vector<8x1xf32>
    %254 = vector.broadcast %253 : vector<8x1xf32> to vector<8x256xf32>
    %255 = arith.mulf %252, %254 : vector<8x256xf32>
    %256 = arith.addf %251, %255 : vector<8x256xf32>
    %c224_i32_33 = arith.constant 224 : i32
    %257 = tpu.dynamic_rotate %129 by %c224_i32_33 dim 1 : vector<8x256xf32>, i32 -> vector<8x256xf32>
    %258 = vector.extract_strided_slice %110 {offsets = [0, 24], sizes = [8, 1], strides = [1, 1]} : vector<8x25xf32> to vector<8x1xf32>
    %259 = vector.broadcast %258 : vector<8x1xf32> to vector<8x256xf32>
    %260 = arith.mulf %257, %259 : vector<8x256xf32>
    %261 = arith.addf %256, %260 : vector<8x256xf32>
    %262 = vector.extract_strided_slice %109 {offsets = [4, 0], sizes = [1, 256], strides = [1, 1]} : vector<5x256xf32> to vector<1x256xf32>
    %263 = vector.broadcast %262 : vector<1x256xf32> to vector<8x256xf32>
    %264 = arith.mulf %263, %261 : vector<8x256xf32>
    %265 = arith.addf %237, %264 : vector<8x256xf32>
    %c0_34 = arith.constant 0 : index
    %c0_35 = arith.constant 0 : index
    %266 = vector.load %arg7[%c0_34, %c0_35] : memref<8x1xf32, #tpu.memory_space<vmem>>, vector<8x1xf32>
    %267 = vector.broadcast %266 : vector<8x1xf32> to vector<8x256xf32>
    %268 = arith.addf %265, %267 : vector<8x256xf32>
    %269 = arith.negf %268 : vector<8x256xf32>
    %270 = math.exp %269 : vector<8x256xf32>
    %cst_36 = arith.constant 1.000000e+00 : f32
    %271 = vector.broadcast %cst_36 : f32 to vector<8x256xf32>
    %272 = arith.addf %271, %270 : vector<8x256xf32>
    %273 = arith.divf %271, %272 : vector<8x256xf32>
    %cst_37 = arith.constant 1.000000e+00 : f32
    %274 = vector.broadcast %cst_37 : f32 to vector<8x256xf32>
    %275 = arith.addf %274, %273 : vector<8x256xf32>
    %276 = arith.mulf %55, %275 : vector<8x256xf32>
    %c0_38 = arith.constant 0 : index
    %c0_39 = arith.constant 0 : index
    %c0_40 = arith.constant 0 : index
    %277 = vector.load %arg10[%c0_38, %c0_39, %c0_40] : memref<1x8x256xf32, #tpu.memory_space<vmem>>, vector<1x8x256xf32>
    %278 = vector.shape_cast %277 : vector<1x8x256xf32> to vector<8x256xf32>
    %279 = vector.shape_cast %276 : vector<8x256xf32> to vector<1x8x256xf32>
    tpu.vector_store %arg10[%c0_38, %c0_39, %c0_40], %279 {strides = array<i32>} : memref<1x8x256xf32, #tpu.memory_space<vmem>>, vector<1x8x256xf32>,
    return
  }
  func.func @transform_0(%arg0: i32) -> (i32, i32, i32) {
    %c0_i32 = arith.constant 0 : i32
    %c0_i32_0 = arith.constant 0 : i32
    %c0_i32_1 = arith.constant 0 : i32
    return %arg0, %c0_i32, %c0_i32_0 : i32, i32, i32
  }
  func.func @transform_1(%arg0: i32) -> (i32, i32) {
    %c0_i32 = arith.constant 0 : i32
    %c0_i32_0 = arith.constant 0 : i32
    %c0_i32_1 = arith.constant 0 : i32
    return %c0_i32, %c0_i32_0 : i32, i32
  }
  func.func @transform_2(%arg0: i32) -> (i32, i32) {
    %c0_i32 = arith.constant 0 : i32
    %c0_i32_0 = arith.constant 0 : i32
    %c0_i32_1 = arith.constant 0 : i32
    return %c0_i32, %c0_i32_0 : i32, i32
  }
  func.func @transform_3(%arg0: i32) -> (i32, i32) {
    %c0_i32 = arith.constant 0 : i32
    %c0_i32_0 = arith.constant 0 : i32
    %c0_i32_1 = arith.constant 0 : i32
    return %c0_i32, %c0_i32_0 : i32, i32
  }
  func.func @transform_4(%arg0: i32) -> (i32, i32) {
    %c0_i32 = arith.constant 0 : i32
    %c0_i32_0 = arith.constant 0 : i32
    %c0_i32_1 = arith.constant 0 : i32
    return %c0_i32, %c0_i32_0 : i32, i32
  }
  func.func @transform_5(%arg0: i32) -> (i32, i32) {
    %c0_i32 = arith.constant 0 : i32
    %c0_i32_0 = arith.constant 0 : i32
    %c0_i32_1 = arith.constant 0 : i32
    return %c0_i32, %c0_i32_0 : i32, i32
  }
  func.func @transform_6(%arg0: i32) -> (i32, i32) {
    %c0_i32 = arith.constant 0 : i32
    %c0_i32_0 = arith.constant 0 : i32
    %c0_i32_1 = arith.constant 0 : i32
    return %c0_i32, %c0_i32_0 : i32, i32
  }
  func.func @transform_7(%arg0: i32) -> (i32, i32) {
    %c0_i32 = arith.constant 0 : i32
    %c0_i32_0 = arith.constant 0 : i32
    %c0_i32_1 = arith.constant 0 : i32
    return %c0_i32, %c0_i32_0 : i32, i32
  }
  func.func @transform_8(%arg0: i32) -> (i32, i32) {
    %c0_i32 = arith.constant 0 : i32
    %c0_i32_0 = arith.constant 0 : i32
    %c0_i32_1 = arith.constant 0 : i32
    return %c0_i32, %c0_i32_0 : i32, i32
  }
  func.func @transform_9(%arg0: i32) -> (i32, i32, i32) {
    %c0_i32 = arith.constant 0 : i32
    %c0_i32_0 = arith.constant 0 : i32
    %c0_i32_1 = arith.constant 0 : i32
    return %arg0, %c0_i32, %c0_i32_0 : i32, i32, i32
  }
}

</mosaic_0001>

<bundles_post_ra>
// kernel: tpu_custom_call.1
= control target key start
LH: loop header
LB: loop body
LE: loop exit
PB: predicated region body
PF: predicated region fallthrough
CT: control target
= control target key end

     0   :  { %14 = vsyncpa [#allocation3], 0  ;;  %s1637_s0 = inlined_call_operand.vmem [shape: f32[1,8,256], index: 0, kind: input, shape index: {}]   ;;  %s1638_s1 = inlined_call_operand.hbm [shape: f32[8,8], index: 1, kind: input, shape index: {}]   ;;  %s1639_s2 = inlined_call_operand.vmem [shape: f32[8,1], index: 2, kind: input, shape index: {}]   ;;  %s1640_s3 = inlined_call_operand.hbm [shape: f32[8,8], index: 3, kind: input, shape index: {}]   ;;  %s1641_s4 = inlined_call_operand.vmem [shape: f32[8,1], index: 4, kind: input, shape index: {}]   ;;  %s1642_s5 = inlined_call_operand.hbm [shape: f32[8,25], index: 5, kind: input, shape index: {}]   ;;  %s1643_s6 = inlined_call_operand.vmem [shape: f32[8,1], index: 6, kind: input, shape index: {}]   ;;  %s1644_s7 = inlined_call_operand.vmem [shape: f32[5,256], index: 7, kind: input, shape index: {}]   ;;  %s1645_s8 = inlined_call_operand.hbm [shape: f32[5,256], index: 8, kind: input, shape index: {}]   ;;  %s1646_s9 = inlined_call_operand.hbm [shape: f32[1,8,256], index: 9, kind: output, shape index: {}]  }
   0x1   :  { %15 = vsyncpa [#allocation6], 0 }
   0x2   :  { %16 = vsyncpa [#allocation9], 0 }
   0x3   :  { %17 = vsyncpa [#allocation4], 0  ;;  %s1056_s30 = smov [#allocation5]   ;;  %s1057_s11 = smov [#allocation2]  }
   0x4   :  { %s38_s10 = sshll.u32 %s1056_s30, 4  ;;  %s26_s12 = sshll.u32 %s1057_s11, 4  ;;  %s39_s10 = int_to_ptr.vmem [resolvable:$true] %s38_s10  ;;  %s27_s12 = int_to_ptr.vmem [resolvable:$true] %s26_s12 }
   0x5   :  { %s956_s13 = scalar_lea.vmem %s39_s10, 128  ;;  %p961_p1 = scmp.lt.s32.totalorder %s39_s10, %s39_s10 }
   0x6   :  { %p957_p0 = scmp.ne.s32.totalorder %s39_s10, %s956_s13  ;;  %p962_p2 = scmp.lt.s32.totalorder %s956_s13, %s956_s13 }
   0x8   :  { %p963_p3 = por %p962_p2, %p961_p1 }
   0xa   :  { %p964_p4 = pnand %p963_p3, %p957_p0 }
   0xc   :  { %967 = shalt.err (!%p964_p4)
}
   0xd   :  { %41 = dma.hbm_to_vmem [thread:$0]  %s1640_s3, 128, %s39_s10, [#allocation6]  }
   0xe   :  { %s976_s16 = scalar_lea.vmem %s27_s12, 128  ;;  %p981_p6 = scmp.lt.s32.totalorder %s27_s12, %s27_s12 }
   0xf   :  { %p977_p5 = scmp.ne.s32.totalorder %s27_s12, %s976_s16  ;;  %p982_p7 = scmp.lt.s32.totalorder %s976_s16, %s976_s16 }
  0x11   :  { %p983_p8 = por %p982_p7, %p981_p6 }
  0x13   :  { %p984_p9 = pnand %p983_p8, %p977_p5 }
  0x15   :  { %987 = shalt.err (!%p984_p9)
}
  0x16   :  { %29 = dma.hbm_to_vmem [thread:$0]  %s1638_s1, 128, %s27_s12, [#allocation3]  }
  0x17   :  { %s1058_s19 = smov [#allocation7]   ;;  %s1059_s21 = smov [#allocation8]  }
  0x18   :  { %s50_s20 = sshll.u32 %s1058_s19, 4  ;;  %s64_s22 = sshll.u32 %s1059_s21, 4  ;;  %s51_s20 = int_to_ptr.vmem [resolvable:$true] %s50_s20  ;;  %s65_s22 = int_to_ptr.vmem [resolvable:$true] %s64_s22 }
  0x19   :  { %s996_s23 = scalar_lea.vmem %s51_s20, 128  ;;  %p1001_p11 = scmp.lt.s32.totalorder %s51_s20, %s51_s20 }
  0x1a   :  { %p997_p10 = scmp.ne.s32.totalorder %s51_s20, %s996_s23  ;;  %p1002_p12 = scmp.lt.s32.totalorder %s996_s23, %s996_s23 }
  0x1c   :  { %p1003_p13 = por %p1002_p12, %p1001_p11 }
  0x1e   :  { %p1004_p0 = pnand %p1003_p13, %p997_p10 }
  0x20   :  { %1007 = shalt.err (!%p1004_p0)
}
  0x21   :  { %53 = dma.hbm_to_vmem [thread:$0]  %s1642_s5, 128, %s51_s20, [#allocation6]  }
  0x22   :  { %s1016_s25 = scalar_lea.vmem %s65_s22, 256  ;;  %p1021_p2 = scmp.lt.s32.totalorder %s65_s22, %s65_s22 }
  0x23   :  { %p1017_p1 = scmp.ne.s32.totalorder %s65_s22, %s1016_s25  ;;  %p1022_p3 = scmp.lt.s32.totalorder %s1016_s25, %s1016_s25 }
  0x25   :  { %p1023_p4 = por %p1022_p3, %p1021_p2 }
  0x27   :  { %p1024_p5 = pnand %p1023_p4, %p1017_p1 }
  0x29   :  { %1027 = shalt.err (!%p1024_p5)
}
  0x2a   :  { %67 = dma.hbm_to_vmem [thread:$0]  %s1645_s8, 256, %s65_s22, [#allocation9]  }
  0x2b   :  { %1048 = dma.done.wait [#allocation3], 128  }
  0x2c   :  { %1049 = vsyncadd [#allocation3], 4294967168 }
  0x2d   :  { %1050 = dma.done.wait [#allocation6], 256  }
  0x2e   :  { %1051 = vsyncadd [#allocation6], 4294967040 }
  0x2f   :  { %1052 = dma.done.wait [#allocation9], 256  }
  0x30   :  { %1053 = vsyncadd [#allocation9], 4294967040  ;;  %v1060_v0 = vmov 2   ;;  %v1061_v1 = vmov 1   ;;  %v82_v2 = vld [vmem:[#allocation2] sm:$0xff]  ;;  %v1062_v3 = vmov 3   ;;  %v90_v31 = vlaneseq }
  0x31   :  { %902 = vset.pattern.permute.xlu1 %v1060_v0  ;;  %901 = vset.pattern.permute.xlu0 %v1061_v1  ;;  %v1063_v4 = vmov 5   ;;  %v83_v5 = vld [vmem:[#allocation5] sm:$0xff]  ;;  %v1064_v6 = vmov 4   ;;  %v1065_v7 = vmov 0   ;;  %v1066_v8 = vmov 6   ;;  %v84_v9 = vld [vmem:[%s1639_s2] sm:$0xff] }
  0x32   :  { %119 = vperm.xlu1 %902, %v82_v2   ;;  %103 = vperm.xlu0 %901, %v82_v2   ;;  %v1067_v10 = vmov 7   ;;  %v221_v11 = vld [vmem:[%s1641_s4] sm:$0xff]  ;;  %v1164_v12 = vld [vmem:[#allocation7] sm:$0xff]  ;;  %v1068_v13 = vmov 10   ;;  %v1069_v14 = vmov 8   ;;  %v1070_v15 = vmov 11  }
  0x33   :  { %v1071_v16 = vmov 16   ;;  %v1072_v17 = vmov 12   ;;  %v1073_v18 = vmov 17   ;;  %v1074_v19 = vmov 15   ;;  %v80_v39 = vld [vmem:[%s1637_s0] sm:$0xff]  ;;  %v81_v40 = vld [vmem:[%s1637_s0 + $0x8] sm:$0xff] }
  0x34   :  { %v1075_v20 = vmov 14   ;;  %v1076_v21 = vmov 9   ;;  %v1077_v22 = vmov 18   ;;  %v1078_v23 = vmov 13   ;;  %s1084_s0 = smov 1   ;;  %s1085_s10 = smov 2  }
  0x35   :  { %v1079_v24 = vmov 23   ;;  %v1080_v25 = vmov 20   ;;  %v1081_v26 = vmov 21   ;;  %v1082_v27 = vmov 22   ;;  %s1086_s11 = smov 127   ;;  %s1087_s12 = smov 126  }
  0x36   :  { %903 = vset.pattern.permute.xlu1 %v1062_v3  ;;  %905 = vset.pattern.permute.xlu0 %v1063_v4  ;;  %v1083_v28 = vmov 19   ;;  %v91_v32 = vshrl.u32 %v90_v31, 7  ;;  %s1088_s13 = smov 32   ;;  %s1090_s14 = smov 112  }
  0x37   :  { %135 = vperm.xlu1 %903, %v82_v2   ;;  %167 = vperm.xlu0 %905, %v82_v2   ;;  %s1091_s15 = smov 16   ;;  %s1092_s16 = smov 96  }
  0x38   :  { %v1189_v35 = vsub.s32 1, %v91_v32  ;;  %v1191_v36 = vsub.s32 0, %v91_v32  ;;  %v1193_v37 = vsub.s32 2, %v91_v32  ;;  %v1203_v41 = vsub.s32 3, %v91_v32 }
  0x39   :  { %v1209_v47 = vsub.s32 4, %v91_v32  ;;  %v1215_v52 = vsub.s32 5, %v91_v32  ;;  %v1219_v61 = vsub.s32 6, %v91_v32 }
  0x3a   :  { %v109_v43 = vrot.slane %v80_v39, %v1189_v35  ;;  %v113_v44 = vrot.slane %v81_v40, %v1189_v35  ;;  %v93_v45 = vrot.slane %v80_v39, %v1191_v36  ;;  %v97_v46 = vrot.slane %v81_v40, %v1191_v36 }
  0x3b   :  { %904 = vset.pattern.permute.xlu1 %v1064_v6  ;;  %304 = vperm.xlu0 %905, %v83_v5   ;;  %v125_v48 = vrot.slane %v80_v39, %v1193_v37  ;;  %v129_v49 = vrot.slane %v81_v40, %v1193_v37  ;;  %v141_v50 = vrot.slane %v80_v39, %v1203_v41 }
  0x3c   :  { %151 = vperm.xlu1 %904, %v82_v2   ;;  %v145_v51 = vrot.slane %v81_v40, %v1203_v41  ;;  %v157_v59 = vrot.slane %v80_v39, %v1209_v47  ;;  %v161_v60 = vrot.slane %v81_v40, %v1209_v47 }
  0x3f   :  { %912 = vset.pattern.permute.xlu0 %v1065_v7 }
  0x40   :  { %906 = vset.pattern.permute.xlu1 %v1066_v8  ;;  %87 = vperm.xlu0 %912, %v82_v2  }
  0x41   :  { %183 = vperm.xlu1 %906, %v82_v2  }
  0x44   :  { %216 = vperm.xlu0 %912, %v84_v9  }
  0x45   :  { %907 = vset.pattern.permute.xlu1 %v1067_v10 }
  0x46   :  { %199 = vperm.xlu1 %907, %v82_v2   ;;  %v173_v2 = vrot.slane %v80_v39, %v1215_v52 }
  0x48   :  { %353 = vperm.xlu0 %912, %v221_v11   ;;  %v193_v11 = vrot.slane %v81_v40, %v1219_v61 }
  0x4a   :  { %908 = vset.pattern.permute.xlu1 %v1065_v7 }
  0x4b   :  { %224 = vperm.xlu1 %908, %v83_v5  }
  0x4c   :  { %915 = vset.pattern.permute.xlu0 %v1060_v0 }
  0x4d   :  { %256 = vperm.xlu0 %915, %v83_v5  }
  0x4f   :  { %909 = vset.pattern.permute.xlu1 %v1061_v1 }
  0x50   :  { %240 = vperm.xlu1 %909, %v83_v5  }
  0x51   :  { %478 = vperm.xlu0 %915, %v1164_v12  }
  0x54   :  { %910 = vset.pattern.permute.xlu1 %v1062_v3 }
  0x55   :  { %272 = vperm.xlu1 %910, %v83_v5   ;;  %917 = vset.pattern.permute.xlu0 %v1062_v3  ;;  %v177_v3 = vrot.slane %v81_v40, %v1215_v52 }
  0x56   :  { %492 = vperm.xlu0 %917, %v1164_v12  }
  0x59   :  { %911 = vset.pattern.permute.xlu1 %v1064_v6 }
  0x5a   :  { %288 = vperm.xlu1 %911, %v83_v5   ;;  %918 = vset.pattern.permute.xlu0 %v1064_v6 }
  0x5b   :  { %506 = vperm.xlu0 %918, %v1164_v12  }
  0x5e   :  { %913 = vset.pattern.permute.xlu1 %v1066_v8 }
  0x5f   :  { %320 = vperm.xlu1 %913, %v83_v5   ;;  %919 = vset.pattern.permute.xlu0 %v1063_v4  ;;  %v1223_v4 = vsub.s32 7, %v91_v32 }
  0x60   :  { %533 = vperm.xlu0 %919, %v1164_v12  }
  0x63   :  { %914 = vset.pattern.permute.xlu1 %v1067_v10 }
  0x64   :  { %336 = vperm.xlu1 %914, %v83_v5   ;;  %920 = vset.pattern.permute.xlu0 %v1066_v8 }
  0x65   :  { %545 = vperm.xlu0 %920, %v1164_v12  }
  0x68   :  { %916 = vset.pattern.permute.xlu1 %v1061_v1 }
  0x69   :  { %464 = vperm.xlu1 %916, %v1164_v12   ;;  %921 = vset.pattern.permute.xlu0 %v1067_v10  ;;  %v189_v10 = vrot.slane %v80_v39, %v1219_v61 }
  0x6a   :  { %559 = vperm.xlu0 %921, %v1164_v12  }
  0x6d   :  { %922 = vset.pattern.permute.xlu1 %v1068_v13 }
  0x6e   :  { %607 = vperm.xlu1 %922, %v1164_v12   ;;  %924 = vset.pattern.permute.xlu0 %v1069_v14 }
  0x6f   :  { %573 = vperm.xlu0 %924, %v1164_v12  }
  0x72   :  { %923 = vset.pattern.permute.xlu1 %v1070_v15 }
  0x73   :  { %613 = vperm.xlu1 %923, %v1164_v12   ;;  %927 = vset.pattern.permute.xlu0 %v1071_v16 }
  0x74   :  { %676 = vperm.xlu0 %927, %v1164_v12  }
  0x77   :  { %925 = vset.pattern.permute.xlu1 %v1072_v17 }
  0x78   :  { %621 = vperm.xlu1 %925, %v1164_v12   ;;  %930 = vset.pattern.permute.xlu0 %v1073_v18  ;;  %v205_v18 = vrot.slane %v80_v39, %v1223_v4 }
  0x79   :  { %690 = vperm.xlu0 %930, %v1164_v12  }
  0x7c   :  { %926 = vset.pattern.permute.xlu1 %v1074_v19  ;;  %v209_v19 = vrot.slane %v81_v40, %v1223_v4 }
  0x7d   :  { %664 = vperm.xlu1 %926, %v1164_v12   ;;  %933 = vset.pattern.permute.xlu0 %v1075_v20 }
  0x7e   :  { %637 = vperm.xlu0 %933, %v1164_v12  }
  0x81   :  { %928 = vset.pattern.permute.xlu1 %v1076_v21 }
  0x82   :  { %587 = vperm.xlu1 %928, %v1164_v12   ;;  %934 = vset.pattern.permute.xlu0 %v1077_v22 }
  0x83   :  { %704 = vperm.xlu0 %934, %v1164_v12  }
  0x86   :  { %929 = vset.pattern.permute.xlu1 %v1078_v23 }
  0x87   :  { %629 = vperm.xlu1 %929, %v1164_v12   ;;  %937 = vset.pattern.permute.xlu0 %v1079_v24 }
  0x8b   :  { %931 = vset.pattern.permute.xlu1 %v1080_v25 }
  0x8c   :  { %745 = vperm.xlu1 %931, %v1164_v12  }
  0x90   :  { %932 = vset.pattern.permute.xlu1 %v1081_v26 }
  0x91   :  { %757 = vperm.xlu1 %932, %v1164_v12  }
  0x95   :  { %935 = vset.pattern.permute.xlu1 %v1082_v27 }
  0x96   :  { %771 = vperm.xlu1 %935, %v1164_v12  }
  0x9a   :  { %936 = vset.pattern.permute.xlu1 %v1083_v28 }
  0x9b   :  { %718 = vperm.xlu1 %936, %v1164_v12  }
  0xad   :  { %v120_v29 = vpop.permute.xlu1 %119  ;;  %v104_v30 = vpop.permute.xlu0 %103 }
  0xae   :  { %v114_v54 = vmul.f32 %v109_v43, %v104_v30  ;;  %v115_v55 = vmul.f32 %v113_v44, %v104_v30  ;;  %v130_v62 = vmul.f32 %v125_v48, %v120_v29  ;;  %v131_v63 = vmul.f32 %v129_v49, %v120_v29 }
  0xb2   :  { %v136_v33 = vpop.permute.xlu1 %135  ;;  %v168_v34 = vpop.permute.xlu0 %167 }
  0xb3   :  { %v146_v5 = vmul.f32 %v141_v50, %v136_v33  ;;  %v147_v6 = vmul.f32 %v145_v51, %v136_v33  ;;  %v178_v20 = vmul.f32 %v173_v2, %v168_v34  ;;  %v179_v21 = vmul.f32 %v177_v3, %v168_v34 }
  0xb6   :  { %v1195_v38 = vpop.permute.xlu0 %304 }
  0xb7   :  { %v152_v42 = vpop.permute.xlu1 %151 }
  0xb8   :  { %v162_v14 = vmul.f32 %v157_v59, %v152_v42  ;;  %v163_v15 = vmul.f32 %v161_v60, %v152_v42 }
  0xbb   :  { %v88_v53 = vpop.permute.xlu0 %87 }
  0xbc   :  { %v98_v56 = vmul.f32 %v93_v45, %v88_v53  ;;  %v99_v57 = vmul.f32 %v97_v46, %v88_v53  ;;  %v184_v58 = vpop.permute.xlu1 %183 }
  0xbd   :  { %v194_v27 = vmul.f32 %v189_v10, %v184_v58  ;;  %v195_v28 = vmul.f32 %v193_v11, %v184_v58 }
  0xbe   :  { %v116_v0 = vadd.f32 %v114_v54, %v98_v56  ;;  %v117_v1 = vadd.f32 %v115_v55, %v99_v57 }
  0xbf   :  { %v217_v24 = vpop.permute.xlu0 %216 }
  0xc0   :  { %v132_v8 = vadd.f32 %v130_v62, %v116_v0  ;;  %v133_v9 = vadd.f32 %v131_v63, %v117_v1 }
  0xc1   :  { %v200_v13 = vpop.permute.xlu1 %199 }
  0xc2   :  { %v148_v16 = vadd.f32 %v146_v5, %v132_v8  ;;  %v149_v17 = vadd.f32 %v147_v6, %v133_v9  ;;  %v210_v33 = vmul.f32 %v205_v18, %v200_v13  ;;  %v211_v42 = vmul.f32 %v209_v19, %v200_v13 }
  0xc3   :  { %v354_v45 = vpop.permute.xlu0 %353 }
  0xc4   :  { %v164_v22 = vadd.f32 %v162_v14, %v148_v16  ;;  %v165_v23 = vadd.f32 %v163_v15, %v149_v17 }
  0xc6   :  { %v180_v25 = vadd.f32 %v178_v20, %v164_v22  ;;  %v181_v26 = vadd.f32 %v179_v21, %v165_v23  ;;  %v225_v29 = vpop.permute.xlu1 %224 }
  0xc8   :  { %v196_v30 = vadd.f32 %v194_v27, %v180_v25  ;;  %v197_v32 = vadd.f32 %v195_v28, %v181_v26  ;;  %v257_v51 = vpop.permute.xlu0 %256 }
  0xca   :  { %v212_v43 = vadd.f32 %v210_v33, %v196_v30  ;;  %v213_v44 = vadd.f32 %v211_v42, %v197_v32 }
  0xcb   :  { %v241_v39 = vpop.permute.xlu1 %240 }
  0xcc   :  { %v1229_v46 = vadd.f32 %v217_v24, %v212_v43  ;;  %v1231_v40 = vadd.f32 %v217_v24, %v213_v44 }
  0xce   :  { %v230_v34 = vrot.slane %v1229_v46, %v1191_v36  ;;  %v234_v48 = vrot.slane %v1231_v40, %v1191_v36  ;;  %v246_v49 = vrot.slane %v1229_v46, %v1189_v35  ;;  %v250_v50 = vrot.slane %v1231_v40, %v1189_v35 }
  0xcf   :  { %v262_v53 = vrot.slane %v1229_v46, %v1193_v37  ;;  %v266_v54 = vrot.slane %v1231_v40, %v1193_v37  ;;  %v278_v55 = vrot.slane %v1229_v46, %v1203_v41  ;;  %v282_v56 = vrot.slane %v1231_v40, %v1203_v41 }
  0xd0   :  { %v235_v57 = vmul.f32 %v230_v34, %v225_v29  ;;  %v236_v58 = vmul.f32 %v234_v48, %v225_v29  ;;  %v251_v59 = vmul.f32 %v246_v49, %v241_v39  ;;  %v252_v60 = vmul.f32 %v250_v50, %v241_v39  ;;  %v273_v62 = vpop.permute.xlu1 %272  ;;  %v1273_v50 = vld [vmem:[#allocation8 + $0x8] sm:$0x1f] }
  0xd1   :  { %v267_v1 = vmul.f32 %v262_v53, %v257_v51  ;;  %v268_v2 = vmul.f32 %v266_v54, %v257_v51  ;;  %v283_v3 = vmul.f32 %v278_v55, %v273_v62  ;;  %v284_v5 = vmul.f32 %v282_v56, %v273_v62 }
  0xd2   :  { %v253_v63 = vadd.f32 %v251_v59, %v235_v57  ;;  %v254_v0 = vadd.f32 %v252_v60, %v236_v58  ;;  %v294_v9 = vrot.slane %v1229_v46, %v1209_v47  ;;  %v298_v10 = vrot.slane %v1231_v40, %v1209_v47  ;;  %v1297_v60 = vpop.permute.xlu0 %478 }
  0xd3   :  { %v310_v13 = vrot.slane %v1229_v46, %v1215_v52  ;;  %v314_v19 = vrot.slane %v1231_v40, %v1215_v52  ;;  %v326_v23 = vrot.slane %v1229_v46, %v1219_v61  ;;  %v330_v26 = vrot.slane %v1231_v40, %v1219_v61 }
  0xd4   :  { %v269_v6 = vadd.f32 %v267_v1, %v253_v63  ;;  %v270_v8 = vadd.f32 %v268_v2, %v254_v0  ;;  %v342_v30 = vrot.slane %v1229_v46, %v1223_v4  ;;  %v346_v52 = vrot.slane %v1231_v40, %v1223_v4  ;;  %v1271_v4 = vld [vmem:[#allocation8] sm:$0x1f] }
  0xd5   :  { %v289_v11 = vpop.permute.xlu1 %288  ;;  %v315_v22 = vmul.f32 %v310_v13, %v1195_v38  ;;  %v316_v24 = vmul.f32 %v314_v19, %v1195_v38  ;;  %v402_v53 = vrot.slane %v1271_v4, %v1193_v37  ;;  %v1089_v59 = vmov 24  }
  0xd6   :  { %v285_v14 = vadd.f32 %v283_v3, %v269_v6  ;;  %v286_v15 = vadd.f32 %v284_v5, %v270_v8  ;;  %v299_v16 = vmul.f32 %v294_v9, %v289_v11  ;;  %v300_v17 = vmul.f32 %v298_v10, %v289_v11  ;;  %v1299_v62 = vpop.permute.xlu0 %492 }
  0xd7   :  { %v379_v19 = vrot.slane %v1273_v50, %v1191_v36 }
  0xd8   :  { %v301_v18 = vadd.f32 %v299_v16, %v285_v14  ;;  %v302_v20 = vadd.f32 %v300_v17, %v286_v15  ;;  %v1334_v16 = vand.u32 127, %v90_v31  ;;  %v392_v31 = vrot.slane %v1271_v4, %v1189_v35 }
  0xda   :  { %v321_v21 = vpop.permute.xlu1 %320  ;;  %v317_v25 = vadd.f32 %v315_v22, %v301_v18  ;;  %v318_v28 = vadd.f32 %v316_v24, %v302_v20  ;;  %v1301_v63 = vpop.permute.xlu0 %506  ;;  %vm369_vm0 = vcmp.lt.s32.totalorder %v1334_v16, 2  ;;  %v375_v18 = vrot.slane %v1271_v4, %v1191_v36 }
  0xdb   :  { %v331_v27 = vmul.f32 %v326_v23, %v321_v21  ;;  %v332_v29 = vmul.f32 %v330_v26, %v321_v21  ;;  %vm386_vm1 = vcmp.lt.s32.totalorder %v1334_v16, 1  ;;  %v396_v26 = vrot.slane %v1273_v50, %v1189_v35 }
  0xdc   :  { %vm413_vm2 = vcmp.lt.s32.totalorder %v1334_v16, 127  ;;  %vm430_vm3 = vcmp.lt.s32.totalorder %v1334_v16, 126  ;;  %vm447_vm4 = vcmp.lt.s32.totalorder %v1334_v16, 32  ;;  %vm529_vm5 = vcmp.lt.s32.totalorder %v1334_v16, 16 }
  0xdd   :  { %v333_v33 = vadd.f32 %v331_v27, %v317_v25  ;;  %v334_v44 = vadd.f32 %v332_v29, %v318_v28  ;;  %vm660_vm6 = vcmp.lt.s32.totalorder %v1334_v16, 112  ;;  %vm741_vm7 = vcmp.lt.s32.totalorder %v1334_v16, 96 }
  0xde   :  { %v1303_v0 = vpop.permute.xlu0 %533 }
  0xdf   :  { %v337_v32 = vpop.permute.xlu1 %336 }
  0xe0   :  { %v347_v42 = vmul.f32 %v342_v30, %v337_v32  ;;  %v348_v43 = vmul.f32 %v346_v52, %v337_v32 }
  0xe2   :  { %v349_v39 = vadd.f32 %v347_v42, %v333_v33  ;;  %v350_v38 = vadd.f32 %v348_v43, %v334_v44  ;;  %v1307_v2 = vpop.permute.xlu0 %545  ;;  %v419_v33 = vrot.slane %v1271_v4, %v1203_v41 }
  0xe4   :  { %v356_v34 = vadd.f32 %v354_v45, %v349_v39  ;;  %v1267_v48 = vpop.permute.xlu1 %464  ;;  %v357_v61 = vadd.f32 %v354_v45, %v350_v38  ;;  %v406_v45 = vrot.slane %v1273_v50, %v1193_v37 }
  0xe6   :  { %382 = vrot.lane.b32.xlu0 %v356_v34, %s1084_s0  ;;  %363 = vrot.lane.b32.xlu1 %v356_v34, %s1085_s10  ;;  %v407_v54 = vmul.f32 %v402_v53, %v356_v34  ;;  %v408_v55 = vmul.f32 %v406_v45, %v357_v61  ;;  %v1311_v5 = vpop.permute.xlu0 %559 }
  0xe9   :  { %v1269_v49 = vpop.permute.xlu1 %607 }
  0xea   :  { %409 = vrot.lane.b32.xlu0 %v356_v34, %s1086_s11  ;;  %365 = vrot.lane.b32.xlu1 %v357_v61, %s1085_s10 }
  0xee   :  { %426 = vrot.lane.b32.xlu0 %v356_v34, %s1087_s12  ;;  %384 = vrot.lane.b32.xlu1 %v357_v61, %s1084_s0  ;;  %v1275_v51 = vpop.permute.xlu1 %613  ;;  %v423_v34 = vrot.slane %v1273_v50, %v1203_v41 }
  0xf2   :  { %785 = vperm.xlu0 %937, %v1164_v12   ;;  %411 = vrot.lane.b32.xlu1 %v357_v61, %s1086_s11 }
  0xf3   :  { %v622_v56 = vpop.permute.xlu1 %621 }
  0xf4   :  { %v1282_v57 = vmul.f32 %v622_v56, %v407_v54  ;;  %v1284_v58 = vmul.f32 %v622_v56, %v408_v55 }
  0xf6   :  { %428 = vrot.lane.b32.xlu1 %v357_v61, %s1087_s12  ;;  %471 = vrot.lane.b32.xlu0 %v407_v54, %s1088_s13 }
  0xf7   :  { %938 = vset.pattern.permute.xlu0 %v1089_v59 }
  0xf8   :  { %v1305_v1 = vpop.permute.xlu1 %664 }
  0xfa   :  { %473 = vrot.lane.b32.xlu1 %v408_v55, %s1088_s13  ;;  %685 = vrot.lane.b32.xlu0 %v408_v55, %s1090_s14 }
  0xfd   :  { %v1309_v3 = vpop.permute.xlu1 %587 }
  0xfe   :  { %552 = vrot.lane.b32.xlu1 %v407_v54, %s1091_s15  ;;  %764 = vrot.lane.b32.xlu0 %v407_v54, %s1092_s16 }
 0x102   :  { %554 = vrot.lane.b32.xlu1 %v408_v55, %s1091_s15  ;;  %799 = vperm.xlu0 %938, %v1164_v12  }
 0x106   :  { %683 = vrot.lane.b32.xlu1 %v407_v54, %s1090_s14  ;;  %939 = vset.pattern.permute.xlu0 %v1065_v7  ;;  %v1313_v7 = vpop.permute.xlu1 %629 }
 0x107   :  { %452 = vperm.xlu0 %939, %v1164_v12   ;;  %v1315_v12 = vpop.permute.xlu0 %573 }
 0x10a   :  { %766 = vrot.lane.b32.xlu1 %v408_v55, %s1092_s16  ;;  %v1317_v6 = vpop.permute.xlu1 %745 }
 0x10b   :  { %v1319_v8 = vpop.permute.xlu0 %676 }
 0x10e   :  { %v1321_v9 = vpop.permute.xlu1 %757 }
 0x10f   :  { %v1323_v10 = vpop.permute.xlu0 %690 }
 0x112   :  { %v1325_v11 = vpop.permute.xlu1 %771 }
 0x113   :  { %v1327_v13 = vpop.permute.xlu0 %637 }
 0x116   :  { %v1329_v14 = vpop.permute.xlu1 %718 }
 0x117   :  { %v1331_v15 = vpop.permute.xlu0 %704 }
 0x158   :  { %v364_v17 = vpop.permute.xlu1 %363  ;;  %v383_v20 = vpop.permute.xlu0 %382 }
 0x15c   :  { %v366_v21 = vpop.permute.xlu1 %365  ;;  %v410_v30 = vpop.permute.xlu0 %409 }
 0x15d   :  { %v370_v22 = vsel %vm369_vm0, %v364_v17, %v366_v21  ;;  %v371_v23 = vsel %vm369_vm0, %v366_v21, %v364_v17 }
 0x15e   :  { %v1342_v24 = vmul.f32 %v375_v18, %v371_v23  ;;  %v1344_v25 = vmul.f32 %v379_v19, %v370_v22 }
 0x160   :  { %v385_v27 = vpop.permute.xlu1 %384  ;;  %445 = vrot.lane.b32.xlu1 %v1344_v25, %s1088_s13  ;;  %443 = vrot.lane.b32.xlu0 %v1342_v24, %s1088_s13  ;;  %v610_v42 = vmul.f32 %v1269_v49, %v1342_v24  ;;  %v611_v43 = vmul.f32 %v1269_v49, %v1344_v25  ;;  %v427_v55 = vpop.permute.xlu0 %426 }
 0x161   :  { %v387_v28 = vsel %vm386_vm1, %v383_v20, %v385_v27  ;;  %v388_v29 = vsel %vm386_vm1, %v385_v27, %v383_v20  ;;  %v440_v20 = vrot.slane %v1273_v50, %v1209_v47 }
 0x162   :  { %v397_v52 = vmul.f32 %v392_v31, %v388_v29  ;;  %v1354_v32 = vmul.f32 %v396_v26, %v387_v28 }
 0x164   :  { %v616_v44 = vmul.f32 %v1275_v51, %v397_v52  ;;  %v617_v39 = vmul.f32 %v1275_v51, %v1354_v32  ;;  %v412_v38 = vpop.permute.xlu1 %411  ;;  %457 = vrot.lane.b32.xlu1 %v397_v52, %s1088_s13  ;;  %459 = vrot.lane.b32.xlu0 %v1354_v32, %s1088_s13  ;;  %v436_v51 = vrot.slane %v1271_v4, %v1209_v47 }
 0x165   :  { %v414_v61 = vsel %vm413_vm2, %v410_v30, %v412_v38  ;;  %v415_v54 = vsel %vm413_vm2, %v412_v38, %v410_v30 }
 0x166   :  { %v618_v49 = vadd.f32 %v616_v44, %v610_v42  ;;  %v619_v53 = vadd.f32 %v617_v39, %v611_v43  ;;  %v424_v45 = vmul.f32 %v419_v33, %v414_v61  ;;  %v1387_v4 = vmul.f32 %v423_v34, %v415_v54  ;;  %v818_v61 = vld [vmem:[%s1643_s6] sm:$0xff] }
 0x168   :  { %v632_v56 = vmul.f32 %v1313_v7, %v424_v45  ;;  %v429_v59 = vpop.permute.xlu1 %428  ;;  %485 = vrot.lane.b32.xlu1 %v424_v45, %s1088_s13  ;;  %566 = vrot.lane.b32.xlu0 %v424_v45, %s1091_s15  ;;  %v1382_v17 = vadd.f32 %v1284_v58, %v619_v53  ;;  %v626_v19 = vadd.f32 %v1282_v57, %v618_v49 }
 0x169   :  { %v431_v18 = vsel %vm430_vm3, %v427_v55, %v429_v59  ;;  %v432_v22 = vsel %vm430_vm3, %v429_v59, %v427_v55 }
 0x16a   :  { %v441_v21 = vmul.f32 %v436_v51, %v431_v18  ;;  %v634_v23 = vadd.f32 %v632_v56, %v626_v19  ;;  %v1399_v57 = vmul.f32 %v440_v20, %v432_v22 }
 0x16c   :  { %v640_v31 = vmul.f32 %v1327_v13, %v441_v21  ;;  %v474_v26 = vpop.permute.xlu1 %473  ;;  %487 = vrot.lane.b32.xlu1 %v1387_v4, %s1088_s13  ;;  %669 = vrot.lane.b32.xlu0 %v397_v52, %s1090_s14 }
 0x16d   :  { %v1397_v58 = vpop.permute.xlu0 %785 }
 0x16e   :  { %v1401_v27 = vadd.f32 %v640_v31, %v634_v23 }
 0x170   :  { %499 = vrot.lane.b32.xlu1 %v441_v21, %s1088_s13  ;;  %v553_v50 = vpop.permute.xlu1 %552  ;;  %582 = vrot.lane.b32.xlu0 %v1399_v57, %s1091_s15 }
 0x171   :  { %v472_v28 = vpop.permute.xlu0 %471 }
 0x172   :  { %v475_v29 = vsel %vm447_vm4, %v472_v28, %v474_v26  ;;  %v476_v30 = vsel %vm447_vm4, %v474_v26, %v472_v28 }
 0x173   :  { %v481_v22 = vmul.f32 %v1297_v60, %v476_v30  ;;  %v482_v23 = vmul.f32 %v1297_v60, %v475_v29 }
 0x174   :  { %501 = vrot.lane.b32.xlu1 %v1399_v57, %s1088_s13  ;;  %v555_v33 = vpop.permute.xlu1 %554  ;;  %737 = vrot.lane.b32.xlu0 %v1342_v24, %s1092_s16 }
 0x175   :  { %v1418_v42 = vsel %vm529_vm5, %v553_v50, %v555_v33  ;;  %v1422_v43 = vsel %vm529_vm5, %v555_v33, %v553_v50  ;;  %v686_v44 = vpop.permute.xlu0 %685 }
 0x178   :  { %525 = vrot.lane.b32.xlu1 %v1342_v24, %s1091_s15  ;;  %v684_v39 = vpop.permute.xlu1 %683  ;;  %750 = vrot.lane.b32.xlu0 %v397_v52, %s1092_s16 }
 0x179   :  { %v1430_v38 = vsel %vm660_vm6, %v684_v39, %v686_v44  ;;  %v1434_v34 = vsel %vm660_vm6, %v686_v44, %v684_v39 }
 0x17c   :  { %527 = vrot.lane.b32.xlu1 %v1344_v25, %s1091_s15  ;;  %778 = vrot.lane.b32.xlu0 %v424_v45, %s1092_s16 }
 0x180   :  { %538 = vrot.lane.b32.xlu1 %v397_v52, %s1091_s15  ;;  %792 = vrot.lane.b32.xlu0 %v441_v21, %s1092_s16 }
 0x184   :  { %540 = vrot.lane.b32.xlu1 %v1354_v32, %s1091_s15  ;;  %821 = vperm.xlu0 %939, %v818_v61  }
 0x188   :  { %568 = vrot.lane.b32.xlu1 %v1387_v4, %s1091_s15 }
 0x18c   :  { %656 = vrot.lane.b32.xlu1 %v1342_v24, %s1090_s14  ;;  %v1469_v24 = vpop.permute.xlu0 %764 }
 0x190   :  { %658 = vrot.lane.b32.xlu1 %v1344_v25, %s1090_s14 }
 0x194   :  { %671 = vrot.lane.b32.xlu1 %v1354_v32, %s1090_s14 }
 0x198   :  { %580 = vrot.lane.b32.xlu1 %v441_v21, %s1091_s15 }
 0x19c   :  { %739 = vrot.lane.b32.xlu1 %v1344_v25, %s1092_s16  ;;  %v1471_v25 = vpop.permute.xlu0 %799 }
 0x1a0   :  { %752 = vrot.lane.b32.xlu1 %v1354_v32, %s1092_s16  ;;  %v453_v52 = vpop.permute.xlu0 %452  ;;  %v1473_v32 = vpop.permute.xlu1 %766 }
 0x1a4   :  { %697 = vrot.lane.b32.xlu1 %v424_v45, %s1090_s14 }
 0x1a8   :  { %699 = vrot.lane.b32.xlu1 %v1387_v4, %s1090_s14 }
 0x1ac   :  { %711 = vrot.lane.b32.xlu1 %v441_v21, %s1090_s14 }
 0x1b0   :  { %713 = vrot.lane.b32.xlu1 %v1399_v57, %s1090_s14 }
 0x1b4   :  { %780 = vrot.lane.b32.xlu1 %v1387_v4, %s1092_s16 }
 0x1b8   :  { %794 = vrot.lane.b32.xlu1 %v1399_v57, %s1092_s16 }
 0x1d2   :  { %v446_v49 = vpop.permute.xlu1 %445  ;;  %v444_v53 = vpop.permute.xlu0 %443 }
 0x1d3   :  { %v448_v45 = vsel %vm447_vm4, %v444_v53, %v446_v49  ;;  %v449_v51 = vsel %vm447_vm4, %v446_v49, %v444_v53 }
 0x1d4   :  { %v455_v18 = vmul.f32 %v453_v52, %v449_v51  ;;  %v456_v19 = vmul.f32 %v453_v52, %v448_v45 }
 0x1d6   :  { %v458_v54 = vpop.permute.xlu1 %457  ;;  %v460_v55 = vpop.permute.xlu0 %459 }
 0x1d7   :  { %v461_v56 = vsel %vm447_vm4, %v458_v54, %v460_v55  ;;  %v462_v59 = vsel %vm447_vm4, %v460_v55, %v458_v54 }
 0x1d8   :  { %v467_v20 = vmul.f32 %v1267_v48, %v462_v59  ;;  %v468_v21 = vmul.f32 %v1267_v48, %v461_v56 }
 0x1da   :  { %v469_v31 = vadd.f32 %v467_v20, %v455_v18  ;;  %v470_v26 = vadd.f32 %v468_v21, %v456_v19  ;;  %v486_v50 = vpop.permute.xlu1 %485 }
 0x1dc   :  { %v483_v28 = vadd.f32 %v481_v22, %v469_v31  ;;  %v484_v33 = vadd.f32 %v482_v23, %v470_v26 }
 0x1de   :  { %v488_v44 = vpop.permute.xlu1 %487 }
 0x1df   :  { %v489_v39 = vsel %vm447_vm4, %v486_v50, %v488_v44  ;;  %v490_v61 = vsel %vm447_vm4, %v488_v44, %v486_v50  ;;  %v567_v44 = vpop.permute.xlu0 %566 }
 0x1e0   :  { %v495_v52 = vmul.f32 %v1299_v62, %v490_v61  ;;  %v496_v48 = vmul.f32 %v1299_v62, %v489_v39 }
 0x1e2   :  { %v497_v49 = vadd.f32 %v495_v52, %v483_v28  ;;  %v498_v30 = vadd.f32 %v496_v48, %v484_v33  ;;  %v500_v53 = vpop.permute.xlu1 %499  ;;  %v562_v28 = vmul.f32 %v1311_v5, %v1422_v43  ;;  %v563_v33 = vmul.f32 %v1311_v5, %v1418_v42 }
 0x1e3   :  { %v670_v42 = vpop.permute.xlu0 %669 }
 0x1e6   :  { %v502_v60 = vpop.permute.xlu1 %501 }
 0x1e7   :  { %v503_v29 = vsel %vm447_vm4, %v500_v53, %v502_v60  ;;  %v504_v45 = vsel %vm447_vm4, %v502_v60, %v500_v53 }
 0x1e8   :  { %v509_v51 = vmul.f32 %v1301_v63, %v504_v45  ;;  %v510_v54 = vmul.f32 %v1301_v63, %v503_v29  ;;  %v633_v45 = vmul.f32 %v1313_v7, %v1387_v4  ;;  %v1543_v7 = vld [vmem:[%s1644_s7 + $0x8] sm:$0x1f] }
 0x1ea   :  { %v1499_v55 = vadd.f32 %v509_v51, %v497_v49  ;;  %v1501_v56 = vadd.f32 %v510_v54, %v498_v30  ;;  %v526_v59 = vpop.permute.xlu1 %525 }
 0x1ee   :  { %v528_v62 = vpop.permute.xlu1 %527 }
 0x1ef   :  { %v530_v19 = vsel %vm529_vm5, %v526_v59, %v528_v62  ;;  %v531_v20 = vsel %vm529_vm5, %v528_v62, %v526_v59 }
 0x1f0   :  { %v536_v23 = vmul.f32 %v1303_v0, %v531_v20  ;;  %v537_v31 = vmul.f32 %v1303_v0, %v530_v19 }
 0x1f2   :  { %v539_v18 = vpop.permute.xlu1 %538 }
 0x1f6   :  { %v541_v21 = vpop.permute.xlu1 %540 }
 0x1f7   :  { %v542_v22 = vsel %vm529_vm5, %v539_v18, %v541_v21  ;;  %v543_v63 = vsel %vm529_vm5, %v541_v21, %v539_v18  ;;  %v1538_v18 = vld [vmem:[%s1644_s7] sm:$0x1f]  ;;  %s1093_s7 = smov [#allocation10]  }
 0x1f8   :  { %v548_v26 = vmul.f32 %v1307_v2, %v543_v63  ;;  %v549_v50 = vmul.f32 %v1307_v2, %v542_v22  ;;  %v641_v22 = vmul.f32 %v1327_v13, %v1399_v57  ;;  %v516_v63 = vrot.slane %v1538_v18, %v1191_v36  ;;  %s850_s22 = sshll.u32 %s1093_s7, 4  ;;  %s851_s22 = int_to_ptr.vmem [resolvable:$true] %s850_s22 }
 0x1f9   :  { %v597_v13 = vrot.slane %v1538_v18, %v1189_v35  ;;  %v601_v57 = vrot.slane %v1543_v7, %v1189_v35  ;;  %v651_v35 = vrot.slane %v1543_v7, %v1193_v37  ;;  %s1028_s23 = scalar_lea.vmem %s851_s22, 256  ;;  %p1033_p7 = scmp.lt.s32.totalorder %s851_s22, %s851_s22 }
 0x1fa   :  { %v550_v39 = vadd.f32 %v548_v26, %v536_v23  ;;  %v551_v61 = vadd.f32 %v549_v50, %v537_v31  ;;  %v569_v52 = vpop.permute.xlu1 %568  ;;  %v520_v23 = vrot.slane %v1543_v7, %v1191_v36  ;;  %v635_v31 = vadd.f32 %v633_v45, %v1382_v17  ;;  %v583_v50 = vpop.permute.xlu0 %582  ;;  %p1029_p6 = scmp.ne.s32.totalorder %s851_s22, %s1028_s23  ;;  %p1034_p8 = scmp.lt.s32.totalorder %s1028_s23, %s1028_s23 }
 0x1fb   :  { %v570_v48 = vsel %vm529_vm5, %v567_v44, %v569_v52  ;;  %v571_v0 = vsel %vm529_vm5, %v569_v52, %v567_v44  ;;  %v693_v26 = vmul.f32 %v1323_v10, %v1430_v38 }
 0x1fc   :  { %v564_v49 = vadd.f32 %v562_v28, %v550_v39  ;;  %v565_v30 = vadd.f32 %v563_v33, %v551_v61  ;;  %v576_v2 = vmul.f32 %v1315_v12, %v571_v0  ;;  %v577_v53 = vmul.f32 %v1315_v12, %v570_v48  ;;  %p1035_p9 = por %p1034_p8, %p1033_p7 }
 0x1fd   :  { %v647_v39 = vrot.slane %v1538_v18, %v1193_v37  ;;  %v643_v0 = vadd.f32 %v641_v22, %v635_v31 }
 0x1fe   :  { %v578_v43 = vadd.f32 %v576_v2, %v564_v49  ;;  %v579_v60 = vadd.f32 %v577_v53, %v565_v30  ;;  %v657_v29 = vpop.permute.xlu1 %656  ;;  %v521_v49 = vmul.f32 %v516_v63, %v1499_v55  ;;  %v522_v30 = vmul.f32 %v520_v23, %v1501_v56  ;;  %p1036_p10 = pnand %p1035_p9, %p1029_p6 }
 0x1ff   :  { %v652_v45 = vmul.f32 %v647_v39, %v1401_v27  ;;  %v769_v23 = vsel %vm741_vm7, %v1473_v32, %v1469_v24 }
 0x202   :  { %v659_v5 = vpop.permute.xlu1 %658 }
 0x203   :  { %v661_v51 = vsel %vm660_vm6, %v657_v29, %v659_v5  ;;  %v662_v54 = vsel %vm660_vm6, %v659_v5, %v657_v29 }
 0x204   :  { %v667_v4 = vmul.f32 %v1305_v1, %v661_v51  ;;  %v668_v19 = vmul.f32 %v1305_v1, %v662_v54  ;;  %v694_v1 = vmul.f32 %v1323_v10, %v1434_v34  ;;  %v738_v54 = vpop.permute.xlu0 %737 }
 0x206   :  { %v672_v59 = vpop.permute.xlu1 %671 }
 0x207   :  { %v673_v62 = vsel %vm660_vm6, %v670_v42, %v672_v59  ;;  %v674_v12 = vsel %vm660_vm6, %v672_v59, %v670_v42  ;;  %v653_v42 = vmul.f32 %v651_v35, %v643_v0 }
 0x208   :  { %v679_v20 = vmul.f32 %v1319_v8, %v673_v62  ;;  %v680_v21 = vmul.f32 %v1319_v8, %v674_v12  ;;  %v751_v12 = vpop.permute.xlu0 %750 }
 0x20a   :  { %v681_v28 = vadd.f32 %v679_v20, %v667_v4  ;;  %v682_v8 = vadd.f32 %v680_v21, %v668_v19  ;;  %v581_v33 = vpop.permute.xlu1 %580 }
 0x20b   :  { %v584_v36 = vsel %vm529_vm5, %v581_v33, %v583_v50  ;;  %v585_v17 = vsel %vm529_vm5, %v583_v50, %v581_v33  ;;  %v728_v50 = vrot.slane %v1538_v18, %v1203_v41 }
 0x20c   :  { %v590_v38 = vmul.f32 %v1309_v3, %v585_v17  ;;  %v591_v10 = vmul.f32 %v1309_v3, %v584_v36  ;;  %v695_v34 = vadd.f32 %v693_v26, %v681_v28  ;;  %v696_v44 = vadd.f32 %v694_v1, %v682_v8 }
 0x20d   :  { %v732_v28 = vrot.slane %v1543_v7, %v1203_v41 }
 0x20e   :  { %v592_v61 = vadd.f32 %v590_v38, %v578_v43  ;;  %v593_v52 = vadd.f32 %v591_v10, %v579_v60  ;;  %v740_v48 = vpop.permute.xlu1 %739 }
 0x20f   :  { %v742_v22 = vsel %vm741_vm7, %v738_v54, %v740_v48  ;;  %v743_v63 = vsel %vm741_vm7, %v740_v48, %v738_v54 }
 0x210   :  { %v602_v2 = vmul.f32 %v597_v13, %v592_v61  ;;  %v603_v53 = vmul.f32 %v601_v57, %v593_v52  ;;  %v779_v13 = vpop.permute.xlu0 %778 }
 0x212   :  { %v604_v29 = vadd.f32 %v602_v2, %v521_v49  ;;  %v605_v3 = vadd.f32 %v603_v53, %v522_v30  ;;  %v753_v5 = vpop.permute.xlu1 %752 }
 0x213   :  { %v754_v20 = vsel %vm741_vm7, %v751_v12, %v753_v5  ;;  %v755_v21 = vsel %vm741_vm7, %v753_v5, %v751_v12 }
 0x214   :  { %v654_v51 = vadd.f32 %v652_v45, %v604_v29  ;;  %v655_v43 = vadd.f32 %v653_v42, %v605_v3  ;;  %v760_v31 = vmul.f32 %v1321_v9, %v754_v20  ;;  %v761_v26 = vmul.f32 %v1321_v9, %v755_v21  ;;  %v793_v0 = vpop.permute.xlu0 %792 }
 0x215   :  { %v813_v29 = vrot.slane %v1543_v7, %v1209_v47 }
 0x216   :  { %v698_v60 = vpop.permute.xlu1 %697 }
 0x21a   :  { %v700_v59 = vpop.permute.xlu1 %699 }
 0x21b   :  { %v701_v37 = vsel %vm660_vm6, %v698_v60, %v700_v59  ;;  %v702_v55 = vsel %vm660_vm6, %v700_v59, %v698_v60 }
 0x21c   :  { %v707_v56 = vmul.f32 %v1331_v15, %v701_v37  ;;  %v708_v62 = vmul.f32 %v1331_v15, %v702_v55  ;;  %v768_v15 = vsel %vm741_vm7, %v1469_v24, %v1473_v32  ;;  %v748_v24 = vmul.f32 %v1317_v6, %v742_v22  ;;  %v822_v55 = vpop.permute.xlu0 %821 }
 0x21d   :  { %v749_v32 = vmul.f32 %v1317_v6, %v743_v63 }
 0x21e   :  { %v709_v4 = vadd.f32 %v707_v56, %v695_v34  ;;  %v710_v27 = vadd.f32 %v708_v62, %v696_v44  ;;  %v712_v19 = vpop.permute.xlu1 %711  ;;  %v762_v36 = vadd.f32 %v760_v31, %v748_v24  ;;  %v774_v34 = vmul.f32 %v1325_v11, %v768_v15 }
 0x21f   :  { %v763_v17 = vadd.f32 %v761_v26, %v749_v32  ;;  %v775_v44 = vmul.f32 %v1325_v11, %v769_v23  ;;  %v809_v11 = vrot.slane %v1538_v18, %v1209_v47 }
 0x220   :  { %v776_v30 = vadd.f32 %v774_v34, %v762_v36 }
 0x221   :  { %v777_v2 = vadd.f32 %v775_v44, %v763_v17 }
 0x222   :  { %v714_v1 = vpop.permute.xlu1 %713 }
 0x223   :  { %v715_v8 = vsel %vm660_vm6, %v712_v19, %v714_v1  ;;  %v716_v33 = vsel %vm660_vm6, %v714_v1, %v712_v19 }
 0x224   :  { %v721_v9 = vmul.f32 %v1329_v14, %v715_v8  ;;  %v722_v57 = vmul.f32 %v1329_v14, %v716_v33 }
 0x226   :  { %v723_v38 = vadd.f32 %v721_v9, %v709_v4  ;;  %v724_v10 = vadd.f32 %v722_v57, %v710_v27  ;;  %v781_v41 = vpop.permute.xlu1 %780 }
 0x227   :  { %v782_v39 = vsel %vm741_vm7, %v779_v13, %v781_v41  ;;  %v783_v61 = vsel %vm741_vm7, %v781_v41, %v779_v13 }
 0x228   :  { %v733_v6 = vmul.f32 %v728_v50, %v723_v38  ;;  %v734_v52 = vmul.f32 %v732_v28, %v724_v10  ;;  %v788_v48 = vmul.f32 %v1397_v58, %v782_v39  ;;  %v789_v14 = vmul.f32 %v1397_v58, %v783_v61 }
 0x22a   :  { %v735_v35 = vadd.f32 %v733_v6, %v654_v51  ;;  %v736_v49 = vadd.f32 %v734_v52, %v655_v43  ;;  %v795_v53 = vpop.permute.xlu1 %794  ;;  %v790_v42 = vadd.f32 %v788_v48, %v776_v30  ;;  %v791_v58 = vadd.f32 %v789_v14, %v777_v2 }
 0x22b   :  { %v796_v3 = vsel %vm741_vm7, %v793_v0, %v795_v53  ;;  %v797_v5 = vsel %vm741_vm7, %v795_v53, %v793_v0 }
 0x22c   :  { %v802_v45 = vmul.f32 %v1471_v25, %v796_v3  ;;  %v803_v51 = vmul.f32 %v1471_v25, %v797_v5 }
 0x22e   :  { %v804_v43 = vadd.f32 %v802_v45, %v790_v42  ;;  %v805_v60 = vadd.f32 %v803_v51, %v791_v58 }
 0x230   :  { %v814_v54 = vmul.f32 %v809_v11, %v804_v43  ;;  %v815_v59 = vmul.f32 %v813_v29, %v805_v60 }
 0x232   :  { %v816_v18 = vadd.f32 %v814_v54, %v735_v35  ;;  %v817_v37 = vadd.f32 %v815_v59, %v736_v49 }
 0x234   :  { %v824_v47 = vadd.f32 %v822_v55, %v816_v18  ;;  %v825_v7 = vadd.f32 %v822_v55, %v817_v37 }
 0x236   :  { %v861_v56 = vmul.f32 -1.442695, %v824_v47  ;;  %v862_v62 = vmul.f32 -1.442695, %v825_v7 }
 0x238   :  { %940 = vpow2.f32 %v861_v56 }
 0x239   :  { %942 = vpow2.f32 %v862_v62 }
 0x245   :  { %v941_v16 = vpop.eup %940 }
 0x246   :  { %v943_v12 = vpop.eup %942  ;;  %v832_v4 = vadd.f32 1.0, %v941_v16 }
 0x247   :  { %v833_v27 = vadd.f32 1.0, %v943_v12 }
 0x248   :  { %944 = vrcp.f32 %v832_v4 }
 0x249   :  { %946 = vrcp.f32 %v833_v27 }
 0x255   :  { %v945_v25 = vpop.eup %944 }
 0x256   :  { %v947_v19 = vpop.eup %946  ;;  %v838_v20 = vadd.f32 1.0, %v945_v25 }
 0x257   :  { %v839_v21 = vadd.f32 1.0, %v947_v19 }
 0x258   :  { %v840_v22 = vmul.f32 %v838_v20, %v1229_v46 }
 0x259   :  { %v841_v63 = vmul.f32 %v839_v21, %v1231_v40 }
 0x25a   :  { %842 = vst [vmem:[#allocation10] sm:$0xff] %v840_v22 }
 0x25b   :  { %843 = vst [vmem:[#allocation10 + $0x8] sm:$0xff] %v841_v63 }
 0x25c   :  { %1039 = shalt.err (!%p1036_p10)
}
 0x25d   :  { %853 = dma.vmem_to_hbm [thread:$0]  %s851_s22, 256, %s1646_s9, [#allocation4]  }
 0x25e   :  { %1054 = dma.done.wait [#allocation4], 256  }
 0x25f   :  { %1055 = vsyncadd [#allocation4], 4294967040 }
 0x260   :  { %857 = vsyncpa [#allocation3], 1 }
 0x261   :  { %858 = vsyncpa [#allocation6], 1 }
 0x262   :  { %859 = vsyncpa [#allocation9], 1 }
 0x263   :  { %860 = vsyncpa [#allocation4], 1 }

</bundles_post_ra>
